<compile_context>
chip_gen: v7x
topology: tpu7x:2x2x1
jax: 0.10.0
libtpu: 0.0.40
codegen_flags: <defaults>
</compile_context>

<pallas_src>
import jax
import jax.numpy as jnp
from jax.experimental import pallas as pl
from jax.experimental.pallas import tpu as pltpu

# ---- static configuration (small shapes consistent with the module) --------
NUM_NODES  = 4
NUM_GPUS   = 4
MAX_JOBS   = 6
HIDDEN_DIM = 256
NUM_HEADS  = 8
EMBED_DIM  = 32
NUM_LAYERS = 4
FFN_DIM    = 2048                  # nn.TransformerEncoderLayer default dim_feedforward
BATCH      = 2
SEQ        = MAX_JOBS + 2          # 8 tokens per sequence: jobs..., cluster, gpu
ROWS       = BATCH * SEQ           # 16
HEAD_DIM   = EMBED_DIM // NUM_HEADS
RH         = ROWS * NUM_HEADS      # 128 (token, head) rows for fused attention
GPU_IN     = NUM_NODES * NUM_GPUS
LN_EPS     = 1e-5
ENC_IN     = 40                    # packed encoder-input width (see pack_params)
NEG_INF    = -1e30


def _layer_norm(x, gamma, beta):
    mu = jnp.mean(x, axis=-1, keepdims=True)
    xc = x - mu
    var = jnp.mean(xc * xc, axis=-1, keepdims=True)
    return xc * jax.lax.rsqrt(var + LN_EPS) * gamma + beta


def critic_kernel(xin_ref, encw_ref, encln_ref, rep_ref, rept_ref, hs_ref,
                  amask_ref, pool_ref,
                  wqkv_ref, bqkv_ref, wo_ref, vecl_ref, w1_ref, b1_ref, w2_ref,
                  wh1_ref, bh1_ref, wh2_ref, bh2_ref,
                  out_ref, x_scr):
    f32 = jnp.float32
    bf16 = jnp.bfloat16
    E = EMBED_DIM

    layer = pl.program_id(0)

    # ---- fused token encoders (one matmul; biases folded into W) -----------
    @pl.when(layer == 0)
    def _():
        h = jnp.dot(xin_ref[...], encw_ref[...], preferred_element_type=f32)  # (ROWS, E)
        gamma   = encln_ref[0:ROWS, :]
        beta    = encln_ref[ROWS:2 * ROWS, :]
        ln_mask = encln_ref[2 * ROWS:3 * ROWS, :]      # 1.0 = apply LN (job/cluster tokens)
        ln_h = _layer_norm(h, gamma, beta)
        x_scr[...] = jnp.maximum(jnp.where(ln_mask > 0.5, ln_h, h), 0.0)

    x = x_scr[...]                                     # (ROWS, E) f32
    vl = vecl_ref[...]                                 # (6, E) = [ln1g, ln1b, ln2g, ln2b, b2, bo]

    # ---- self-attention: all 8 heads in one masked (128,128) attention -----
    # 1/sqrt(head_dim) is folded into Wq / bq at pack time.
    qkv = jnp.dot(x.astype(bf16), wqkv_ref[...],
                  preferred_element_type=f32) + bqkv_ref[...]                 # (ROWS, 3E)
    qkv128 = jnp.dot(rep_ref[...], qkv, preferred_element_type=f32)           # (RH, 3E)
    hs = hs_ref[...]                                   # (RH, E) per-head dim selector (0/1)
    q = qkv128[:, 0:E]
    k = qkv128[:, E:2 * E] * hs
    v = qkv128[:, 2 * E:3 * E] * hs
    s = jax.lax.dot_general(q, k, (((1,), (1,)), ((), ())),
                            preferred_element_type=f32)                       # (RH, RH)
    s = s + amask_ref[...]                             # mask cross-head + cross-batch
    s = s - jnp.max(s, axis=-1, keepdims=True)
    p = jnp.exp(s)
    p = p * pl.reciprocal(jnp.sum(p, axis=-1, keepdims=True), approx=True)
    o_wide = jnp.dot(p, v, preferred_element_type=f32)                        # (RH, E)
    o = jnp.dot(rept_ref[...], o_wide, preferred_element_type=f32)            # (ROWS, E)
    attn = jnp.dot(o.astype(bf16), wo_ref[...],
                   preferred_element_type=f32) + vl[5:6, :]                   # + out_proj bias

    # ---- post-norm residual + ReLU FFN (dropout = identity) ----------------
    x = _layer_norm(x + attn, vl[0:1, :], vl[1:2, :])
    ff = jnp.dot(x.astype(bf16), w1_ref[...],
                 preferred_element_type=f32) + b1_ref[...]                    # (ROWS, FFN_DIM)
    ff = jnp.maximum(ff, 0.0)
    ff = jnp.dot(ff.astype(bf16), w2_ref[...],
                 preferred_element_type=f32) + vl[4:5, :]
    x = _layer_norm(x + ff, vl[2:3, :], vl[3:4, :])
    x_scr[...] = x

    # ---- mean pool (pooling-matrix matmul) + value head ---------------------
    @pl.when(layer == NUM_LAYERS - 1)
    def _():
        pooled = jnp.dot(pool_ref[...], x, preferred_element_type=f32)        # (B, E)
        h1 = jnp.maximum(jnp.dot(pooled, wh1_ref[...], preferred_element_type=f32)
                         + bh1_ref[...], 0.0)                                 # (B, HIDDEN)
        out_ref[...] = jnp.dot(h1, wh2_ref[...], preferred_element_type=f32) + bh2_ref[...]


# ---- parameter construction / packing ---------------------------------------
def init_params(key):
    ks = iter(jax.random.split(key, 32))
    nrm   = lambda shape, fan_in: jax.random.normal(next(ks), shape, jnp.float32) / jnp.sqrt(float(fan_in))
    small = lambda shape: 0.01 * jax.random.normal(next(ks), shape, jnp.float32)

    L, E, F, H = NUM_LAYERS, EMBED_DIM, FFN_DIM, HIDDEN_DIM
    return dict(
        wj=nrm((3, E), 3), bj=small((E,)), gj=jnp.ones((E,)), bjln=jnp.zeros((E,)),
        wc=nrm((NUM_NODES, E), NUM_NODES), bc=small((E,)), gc=jnp.ones((E,)), bcln=jnp.zeros((E,)),
        wg=nrm((GPU_IN, E), GPU_IN), bg=small((E,)),
        wq=nrm((L, E, E), E), wk=nrm((L, E, E), E), wv=nrm((L, E, E), E), wo=nrm((L, E, E), E),
        bq=small((L, E)), bk=small((L, E)), bv=small((L, E)), bo=small((L, E)),
        ln1g=jnp.ones((L, E)), ln1b=jnp.zeros((L, E)),
        ln2g=jnp.ones((L, E)), ln2b=jnp.zeros((L, E)),
        w1=nrm((L, E, F), E), b1=small((L, F)),
        w2=nrm((L, F, E), F), b2=small((L, E)),
        wh1=nrm((E, H), E), bh1=small((H,)),
        wh2=nrm((H, 1), H), bh2=small((1,)),
    )


def pack_params(p):
    L, E, H = NUM_LAYERS, EMBED_DIM, NUM_HEADS
    f32, bf16 = jnp.float32, jnp.bfloat16
    scale = 1.0 / (HEAD_DIM ** 0.5)

    # Fused encoder weight: disjoint input-column ranges per token type plus one
    # bias-indicator row per token type (columns 32/33/34 of x_in are 1.0).
    enc_w = jnp.zeros((ENC_IN, E), f32)
    enc_w = enc_w.at[0:3, :].set(p['wj'])
    enc_w = enc_w.at[8:8 + NUM_NODES, :].set(p['wc'])
    enc_w = enc_w.at[16:16 + GPU_IN, :].set(p['wg'])
    enc_w = enc_w.at[32, :].set(p['bj'])
    enc_w = enc_w.at[33, :].set(p['bc'])
    enc_w = enc_w.at[34, :].set(p['bg'])
    enc_w = enc_w.astype(bf16)

    # Per-row LayerNorm gamma/beta + "apply LN" mask (gpu token rows: no LN).
    gamma = jnp.ones((ROWS, E), f32)
    beta  = jnp.zeros((ROWS, E), f32)
    mask  = jnp.ones((ROWS, E), f32)
    for b in range(BATCH):
        gamma = gamma.at[b * SEQ:b * SEQ + MAX_JOBS, :].set(p['gj'])
        gamma = gamma.at[b * SEQ + MAX_JOBS, :].set(p['gc'])
        beta  = beta.at[b * SEQ:b * SEQ + MAX_JOBS, :].set(p['bjln'])
        beta  = beta.at[b * SEQ + MAX_JOBS, :].set(p['bcln'])
        mask  = mask.at[b * SEQ + MAX_JOBS + 1, :].set(0.0)
    enc_ln = jnp.concatenate([gamma, beta, mask], axis=0)                   # (3*ROWS, E)

    # Constants for the fused multi-head attention: row index = token*H + head.
    rh_idx = jnp.arange(RH)
    tok    = rh_idx // H
    head   = rh_idx % H
    rep  = (tok[:, None] == jnp.arange(ROWS)[None, :]).astype(f32)          # (RH, ROWS)
    rept = rep.T                                                            # (ROWS, RH)
    hs   = (head[:, None] == (jnp.arange(E)[None, :] // HEAD_DIM)).astype(f32)   # (RH, E)
    same = (head[:, None] == head[None, :]) & \
           ((tok[:, None] // SEQ) == (tok[None, :] // SEQ))
    amask = jnp.where(same, 0.0, NEG_INF).astype(f32)                       # (RH, RH)

    # Mean-pool as a matmul: pool[b, r] = 1/SEQ iff r belongs to batch b.
    pool = ((jnp.arange(ROWS)[None, :] // SEQ) ==
            jnp.arange(BATCH)[:, None]).astype(f32) / SEQ                   # (B, ROWS)

    # Attention weights: scale folded into Wq / bq; bf16 storage.
    wqkv = jnp.concatenate([p['wq'] * scale, p['wk'], p['wv']], axis=-1).astype(bf16)  # (L,E,3E)
    bqkv = jnp.concatenate([p['bq'] * scale, p['bk'], p['bv']], axis=-1)[:, None, :]   # (L,1,3E)
    wo   = p['wo'].astype(bf16)                                                        # (L,E,E)
    vecl = jnp.stack([p['ln1g'], p['ln1b'], p['ln2g'], p['ln2b'], p['b2'], p['bo']],
                     axis=1)                                                           # (L,6,E)

    w1 = p['w1'].astype(bf16)              # bf16 storage, f32 accumulation in-kernel
    b1 = p['b1'][:, None, :]
    w2 = p['w2'].astype(bf16)

    return (enc_w, enc_ln, rep, rept, hs, amask, pool,
            wqkv, bqkv, wo, vecl, w1, b1, w2,
            p['wh1'], p['bh1'][None, :], p['wh2'], p['bh2'][None, :])


def _grid_spec():
    E, F, H = EMBED_DIM, FFN_DIM, HIDDEN_DIM
    cst = lambda l: (0, 0)
    per_layer = lambda l: (l, 0, 0)
    return pltpu.PrefetchScalarGridSpec(
        num_scalar_prefetch=0,
        grid=(NUM_LAYERS,),
        in_specs=[
            pl.BlockSpec((ROWS, ENC_IN), cst),            # x_in
            pl.BlockSpec((ENC_IN, E), cst),               # enc_w
            pl.BlockSpec((3 * ROWS, E), cst),             # enc_ln
            pl.BlockSpec((RH, ROWS), cst),                # rep
            pl.BlockSpec((ROWS, RH), cst),                # rep^T
            pl.BlockSpec((RH, E), cst),                   # head-dim selector
            pl.BlockSpec((RH, RH), cst),                  # additive attention mask
            pl.BlockSpec((BATCH, ROWS), cst),             # pooling matrix
            pl.BlockSpec((None, E, 3 * E), per_layer),    # wqkv
            pl.BlockSpec((None, 1, 3 * E), per_layer),    # bqkv
            pl.BlockSpec((None, E, E), per_layer),        # wo
            pl.BlockSpec((None, 6, E), per_layer),        # ln1/ln2/b2/bo vectors
            pl.BlockSpec((None, E, F), per_layer),        # w1
            pl.BlockSpec((None, 1, F), per_layer),        # b1
            pl.BlockSpec((None, F, E), per_layer),        # w2
            pl.BlockSpec((E, H), cst),                    # value-head w1
            pl.BlockSpec((1, H), cst),                    # value-head b1
            pl.BlockSpec((H, 1), cst),                    # value-head w2
            pl.BlockSpec((1, 1), cst),                    # value-head b2
        ],
        out_specs=pl.BlockSpec((BATCH, 1), cst),
        scratch_shapes=[pltpu.VMEM((ROWS, EMBED_DIM), jnp.float32)],
    )


@jax.jit
def critic_forward(jobs, cluster, gpu_left, packed):
    f32 = jnp.float32
    # Packed encoder input: job feats cols 0:3, cluster cols 8:12, gpu cols 16:32,
    # bias-indicator columns 32 (job) / 33 (cluster) / 34 (gpu); rest zero.
    x_in = jnp.zeros((BATCH, SEQ, ENC_IN), f32)
    x_in = x_in.at[:, :MAX_JOBS, 0:3].set(jobs.astype(f32))
    x_in = x_in.at[:, :MAX_JOBS, 32].set(1.0)
    x_in = x_in.at[:, MAX_JOBS, 8:8 + NUM_NODES].set(cluster.astype(f32))
    x_in = x_in.at[:, MAX_JOBS, 33].set(1.0)
    x_in = x_in.at[:, MAX_JOBS + 1, 16:16 + GPU_IN].set(
        gpu_left.astype(f32).reshape(BATCH, GPU_IN))
    x_in = x_in.at[:, MAX_JOBS + 1, 34].set(1.0)
    x_in = x_in.reshape(ROWS, ENC_IN).astype(jnp.bfloat16)

    out = pl.pallas_call(
        critic_kernel,
        out_shape=jax.ShapeDtypeStruct((BATCH, 1), jnp.float32),
        grid_spec=_grid_spec(),
        compiler_params=pltpu.CompilerParams(
            dimension_semantics=("arbitrary",),
            vmem_limit_bytes=16 * 1024 * 1024),
    )(x_in, *packed)
    return out[:, 0]                           # matches value.squeeze(-1) -> (B,)


if __name__ == "__main__":
    key = jax.random.PRNGKey(0)
    kj, kc, kg = jax.random.split(key, 3)
    jobs = jax.random.uniform(kj, (BATCH, MAX_JOBS, 3), jnp.float32)
    cluster = jax.random.uniform(kc, (BATCH, NUM_NODES), jnp.float32)
    gpu_left = jax.random.uniform(kg, (BATCH, NUM_NODES, NUM_GPUS), jnp.float32)
    params = pack_params(init_params(jax.random.PRNGKey(42)))

    value = critic_forward(jobs, cluster, gpu_left, params)
    jax.block_until_ready(value)
    assert value.shape == (BATCH,) and value.dtype == jnp.float32
    assert bool(jnp.all(jnp.isfinite(value)))
    print("KERNEL_OK")
</pallas_src>

<mosaic_0001>
module attributes {stable_mosaic.version = 11 : i64} {
  func.func @critic_kernel(%arg0: i32, %arg1: memref<16x40xbf16, #tpu.memory_space<vmem>>, %arg2: memref<40x32xbf16, #tpu.memory_space<vmem>>, %arg3: memref<48x32xf32, #tpu.memory_space<vmem>>, %arg4: memref<128x16xf32, #tpu.memory_space<vmem>>, %arg5: memref<16x128xf32, #tpu.memory_space<vmem>>, %arg6: memref<128x32xf32, #tpu.memory_space<vmem>>, %arg7: memref<128x128xf32, #tpu.memory_space<vmem>>, %arg8: memref<2x16xf32, #tpu.memory_space<vmem>>, %arg9: memref<1x32x96xbf16, #tpu.memory_space<vmem>>, %arg10: memref<1x1x96xf32, #tpu.memory_space<vmem>>, %arg11: memref<1x32x32xbf16, #tpu.memory_space<vmem>>, %arg12: memref<1x6x32xf32, #tpu.memory_space<vmem>>, %arg13: memref<1x32x2048xbf16, #tpu.memory_space<vmem>>, %arg14: memref<1x1x2048xf32, #tpu.memory_space<vmem>>, %arg15: memref<1x2048x32xbf16, #tpu.memory_space<vmem>>, %arg16: memref<32x256xf32, #tpu.memory_space<vmem>>, %arg17: memref<1x256xf32, #tpu.memory_space<vmem>>, %arg18: memref<256x1xf32, #tpu.memory_space<vmem>>, %arg19: memref<1x1xf32, #tpu.memory_space<vmem>>, %arg20: memref<2x1xf32, #tpu.memory_space<vmem>>, %arg21: memref<16x32xf32, #tpu.memory_space<vmem>>) attributes {dimension_semantics = [#tpu.dimension_semantics<arbitrary>], iteration_bounds = array<i64: 4>, scalar_prefetch = 0 : i64, scratch_operands = 1 : i64, tpu.core_type = #tpu.core_type<tc>, window_params = [{pipeline_mode = #tpu.pipeline_mode<synchronous>, transform_indices = @transform_0, window_bounds = array<i64: 16, 40>}, {pipeline_mode = #tpu.pipeline_mode<synchronous>, transform_indices = @transform_1, window_bounds = array<i64: 40, 32>}, {pipeline_mode = #tpu.pipeline_mode<synchronous>, transform_indices = @transform_2, window_bounds = array<i64: 48, 32>}, {pipeline_mode = #tpu.pipeline_mode<synchronous>, transform_indices = @transform_3, window_bounds = array<i64: 128, 16>}, {pipeline_mode = #tpu.pipeline_mode<synchronous>, transform_indices = @transform_4, window_bounds = array<i64: 16, 128>}, {pipeline_mode = #tpu.pipeline_mode<synchronous>, transform_indices = @transform_5, window_bounds = array<i64: 128, 32>}, {pipeline_mode = #tpu.pipeline_mode<synchronous>, transform_indices = @transform_6, window_bounds = array<i64: 128, 128>}, {pipeline_mode = #tpu.pipeline_mode<synchronous>, transform_indices = @transform_7, window_bounds = array<i64: 2, 16>}, {transform_indices = @transform_8, window_bounds = array<i64: 1, 32, 96>}, {transform_indices = @transform_9, window_bounds = array<i64: 1, 1, 96>}, {transform_indices = @transform_10, window_bounds = array<i64: 1, 32, 32>}, {transform_indices = @transform_11, window_bounds = array<i64: 1, 6, 32>}, {transform_indices = @transform_12, window_bounds = array<i64: 1, 32, 2048>}, {transform_indices = @transform_13, window_bounds = array<i64: 1, 1, 2048>}, {transform_indices = @transform_14, window_bounds = array<i64: 1, 2048, 32>}, {pipeline_mode = #tpu.pipeline_mode<synchronous>, transform_indices = @transform_15, window_bounds = array<i64: 32, 256>}, {pipeline_mode = #tpu.pipeline_mode<synchronous>, transform_indices = @transform_16, window_bounds = array<i64: 1, 256>}, {pipeline_mode = #tpu.pipeline_mode<synchronous>, transform_indices = @transform_17, window_bounds = array<i64: 256, 1>}, {pipeline_mode = #tpu.pipeline_mode<synchronous>, transform_indices = @transform_18, window_bounds = array<i64: 1, 1>}, {pipeline_mode = #tpu.pipeline_mode<synchronous>, transform_indices = @transform_19, window_bounds = array<i64: 2, 1>}]} {
    %c0_i32 = arith.constant 0 : i32
    %0 = arith.cmpi eq, %arg0, %c0_i32 : i32
    %1 = arith.extui %0 : i1 to i32
    %c0_i32_0 = arith.constant 0 : i32
    %2 = arith.cmpi ne, %1, %c0_i32_0 : i32
    scf.if %2 {
      %c0_54 = arith.constant 0 : index
      %c0_55 = arith.constant 0 : index
      %112 = vector.load %arg1[%c0_54, %c0_55] : memref<16x40xbf16, #tpu.memory_space<vmem>>, vector<16x40xbf16>
      %c0_56 = arith.constant 0 : index
      %c0_57 = arith.constant 0 : index
      %113 = vector.load %arg2[%c0_56, %c0_57] : memref<40x32xbf16, #tpu.memory_space<vmem>>, vector<40x32xbf16>
      %cst_58 = arith.constant dense<0.000000e+00> : vector<16x32xf32>
      %114 = tpu.matmul %112, %113, %cst_58 {dimension_numbers = #tpu.dot_dimension_numbers<[1], [0], [0], [1], [0, 0, 1, 1], [], []>} : vector<16x40xbf16>, vector<40x32xbf16>, vector<16x32xf32> -> vector<16x32xf32>
      %c0_59 = arith.constant 0 : index
      %c0_60 = arith.constant 0 : index
      %115 = vector.load %arg3[%c0_59, %c0_60] : memref<48x32xf32, #tpu.memory_space<vmem>>, vector<16x32xf32>
      %c16 = arith.constant 16 : index
      %c0_61 = arith.constant 0 : index
      %116 = vector.load %arg3[%c16, %c0_61] : memref<48x32xf32, #tpu.memory_space<vmem>>, vector<16x32xf32>
      %c32 = arith.constant 32 : index
      %c0_62 = arith.constant 0 : index
      %117 = vector.load %arg3[%c32, %c0_62] : memref<48x32xf32, #tpu.memory_space<vmem>>, vector<16x32xf32>
      %cst_63 = arith.constant dense<0.000000e+00> : vector<16xf32>
      %118 = vector.multi_reduction <add>, %114, %cst_63 [1] : vector<16x32xf32> to vector<16xf32>
      %119 = vector.shape_cast %118 : vector<16xf32> to vector<16x1xf32>
      %cst_64 = arith.constant 3.200000e+01 : f32
      %120 = vector.broadcast %cst_64 : f32 to vector<16x1xf32>
      %121 = arith.divf %119, %120 : vector<16x1xf32>
      %122 = vector.broadcast %121 : vector<16x1xf32> to vector<16x32xf32>
      %123 = arith.subf %114, %122 : vector<16x32xf32>
      %124 = arith.mulf %123, %123 : vector<16x32xf32>
      %cst_65 = arith.constant dense<0.000000e+00> : vector<16xf32>
      %125 = vector.multi_reduction <add>, %124, %cst_65 [1] : vector<16x32xf32> to vector<16xf32>
      %126 = vector.shape_cast %125 : vector<16xf32> to vector<16x1xf32>
      %cst_66 = arith.constant 3.200000e+01 : f32
      %127 = vector.broadcast %cst_66 : f32 to vector<16x1xf32>
      %128 = arith.divf %126, %127 : vector<16x1xf32>
      %cst_67 = arith.constant 9.99999974E-6 : f32
      %129 = vector.broadcast %cst_67 : f32 to vector<16x1xf32>
      %130 = arith.addf %128, %129 : vector<16x1xf32>
      %131 = math.rsqrt %130 : vector<16x1xf32>
      %132 = vector.broadcast %131 : vector<16x1xf32> to vector<16x32xf32>
      %133 = arith.mulf %123, %132 : vector<16x32xf32>
      %134 = arith.mulf %133, %115 : vector<16x32xf32>
      %135 = arith.addf %134, %116 : vector<16x32xf32>
      %cst_68 = arith.constant 5.000000e-01 : f32
      %136 = vector.broadcast %cst_68 : f32 to vector<16x32xf32>
      %137 = arith.cmpf ogt, %117, %136 : vector<16x32xf32>
      %138 = arith.select %137, %135, %114 : vector<16x32xi1>, vector<16x32xf32>
      %cst_69 = arith.constant 0.000000e+00 : f32
      %139 = vector.broadcast %cst_69 : f32 to vector<16x32xf32>
      %140 = arith.maximumf %138, %139 : vector<16x32xf32>
      %c0_70 = arith.constant 0 : index
      %c0_71 = arith.constant 0 : index
      %141 = vector.load %arg21[%c0_70, %c0_71] : memref<16x32xf32, #tpu.memory_space<vmem>>, vector<16x32xf32>
      tpu.vector_store %arg21[%c0_70, %c0_71], %140 {strides = array<i32>} : memref<16x32xf32, #tpu.memory_space<vmem>>, vector<16x32xf32>,
    } else {
    }
    %c0 = arith.constant 0 : index
    %c0_1 = arith.constant 0 : index
    %3 = vector.load %arg21[%c0, %c0_1] : memref<16x32xf32, #tpu.memory_space<vmem>>, vector<16x32xf32>
    %c0_2 = arith.constant 0 : index
    %c0_3 = arith.constant 0 : index
    %c0_4 = arith.constant 0 : index
    %4 = vector.load %arg12[%c0_2, %c0_3, %c0_4] : memref<1x6x32xf32, #tpu.memory_space<vmem>>, vector<1x6x32xf32>
    %5 = vector.shape_cast %4 : vector<1x6x32xf32> to vector<6x32xf32>
    %6 = arith.truncf %3 : vector<16x32xf32> to vector<16x32xbf16>
    %c0_5 = arith.constant 0 : index
    %c0_6 = arith.constant 0 : index
    %c0_7 = arith.constant 0 : index
    %7 = vector.load %arg9[%c0_5, %c0_6, %c0_7] : memref<1x32x96xbf16, #tpu.memory_space<vmem>>, vector<1x32x96xbf16>
    %8 = vector.shape_cast %7 : vector<1x32x96xbf16> to vector<32x96xbf16>
    %cst = arith.constant dense<0.000000e+00> : vector<16x96xf32>
    %9 = tpu.matmul %6, %8, %cst {dimension_numbers = #tpu.dot_dimension_numbers<[1], [0], [0], [1], [0, 0, 1, 1], [], []>} : vector<16x32xbf16>, vector<32x96xbf16>, vector<16x96xf32> -> vector<16x96xf32>
    %c0_8 = arith.constant 0 : index
    %c0_9 = arith.constant 0 : index
    %c0_10 = arith.constant 0 : index
    %10 = vector.load %arg10[%c0_8, %c0_9, %c0_10] : memref<1x1x96xf32, #tpu.memory_space<vmem>>, vector<1x1x96xf32>
    %11 = vector.shape_cast %10 : vector<1x1x96xf32> to vector<1x96xf32>
    %12 = vector.broadcast %11 : vector<1x96xf32> to vector<16x96xf32>
    %13 = arith.addf %9, %12 : vector<16x96xf32>
    %c0_11 = arith.constant 0 : index
    %c0_12 = arith.constant 0 : index
    %14 = vector.load %arg4[%c0_11, %c0_12] : memref<128x16xf32, #tpu.memory_space<vmem>>, vector<128x16xf32>
    %cst_13 = arith.constant dense<0.000000e+00> : vector<128x96xf32>
    %15 = tpu.matmul %14, %13, %cst_13 {dimension_numbers = #tpu.dot_dimension_numbers<[1], [0], [0], [1], [0, 0, 1, 1], [], []>} : vector<128x16xf32>, vector<16x96xf32>, vector<128x96xf32> -> vector<128x96xf32>
    %c0_14 = arith.constant 0 : index
    %c0_15 = arith.constant 0 : index
    %16 = vector.load %arg6[%c0_14, %c0_15] : memref<128x32xf32, #tpu.memory_space<vmem>>, vector<128x32xf32>
    %17 = vector.extract_strided_slice %15 {offsets = [0, 0], sizes = [128, 32], strides = [1, 1]} : vector<128x96xf32> to vector<128x32xf32>
    %18 = vector.extract_strided_slice %15 {offsets = [0, 32], sizes = [128, 32], strides = [1, 1]} : vector<128x96xf32> to vector<128x32xf32>
    %19 = arith.mulf %18, %16 : vector<128x32xf32>
    %20 = vector.extract_strided_slice %15 {offsets = [0, 64], sizes = [128, 32], strides = [1, 1]} : vector<128x96xf32> to vector<128x32xf32>
    %21 = arith.mulf %20, %16 : vector<128x32xf32>
    %cst_16 = arith.constant dense<0.000000e+00> : vector<128x128xf32>
    %22 = tpu.matmul %17, %19, %cst_16 {dimension_numbers = #tpu.dot_dimension_numbers<[1], [1], [0], [0], [0, 0, 1, 0], [], []>} : vector<128x32xf32>, vector<128x32xf32>, vector<128x128xf32> -> vector<128x128xf32>
    %c0_17 = arith.constant 0 : index
    %c0_18 = arith.constant 0 : index
    %23 = vector.load %arg7[%c0_17, %c0_18] : memref<128x128xf32, #tpu.memory_space<vmem>>, vector<128x128xf32>
    %24 = arith.addf %22, %23 : vector<128x128xf32>
    %cst_19 = arith.constant dense<0xFF800000> : vector<128xf32>
    %25 = vector.multi_reduction <maximumf>, %24, %cst_19 [1] : vector<128x128xf32> to vector<128xf32>
    %26 = vector.shape_cast %25 : vector<128xf32> to vector<128x1xf32>
    %27 = vector.broadcast %26 : vector<128x1xf32> to vector<128x128xf32>
    %28 = arith.subf %24, %27 : vector<128x128xf32>
    %29 = math.exp %28 : vector<128x128xf32>
    %cst_20 = arith.constant dense<0.000000e+00> : vector<128xf32>
    %30 = vector.multi_reduction <add>, %29, %cst_20 [1] : vector<128x128xf32> to vector<128xf32>
    %31 = vector.shape_cast %30 : vector<128xf32> to vector<128x1xf32>
    %32 = tpu.reciprocal %31 {approx = true} : vector<128x1xf32> -> vector<128x1xf32>
    %33 = vector.broadcast %32 : vector<128x1xf32> to vector<128x128xf32>
    %34 = arith.mulf %29, %33 : vector<128x128xf32>
    %cst_21 = arith.constant dense<0.000000e+00> : vector<128x32xf32>
    %35 = tpu.matmul %34, %21, %cst_21 {dimension_numbers = #tpu.dot_dimension_numbers<[1], [0], [0], [1], [0, 0, 1, 1], [], []>} : vector<128x128xf32>, vector<128x32xf32>, vector<128x32xf32> -> vector<128x32xf32>
    %c0_22 = arith.constant 0 : index
    %c0_23 = arith.constant 0 : index
    %36 = vector.load %arg5[%c0_22, %c0_23] : memref<16x128xf32, #tpu.memory_space<vmem>>, vector<16x128xf32>
    %cst_24 = arith.constant dense<0.000000e+00> : vector<16x32xf32>
    %37 = tpu.matmul %36, %35, %cst_24 {dimension_numbers = #tpu.dot_dimension_numbers<[1], [0], [0], [1], [0, 0, 1, 1], [], []>} : vector<16x128xf32>, vector<128x32xf32>, vector<16x32xf32> -> vector<16x32xf32>
    %38 = arith.truncf %37 : vector<16x32xf32> to vector<16x32xbf16>
    %c0_25 = arith.constant 0 : index
    %c0_26 = arith.constant 0 : index
    %c0_27 = arith.constant 0 : index
    %39 = vector.load %arg11[%c0_25, %c0_26, %c0_27] : memref<1x32x32xbf16, #tpu.memory_space<vmem>>, vector<1x32x32xbf16>
    %40 = vector.shape_cast %39 : vector<1x32x32xbf16> to vector<32x32xbf16>
    %cst_28 = arith.constant dense<0.000000e+00> : vector<16x32xf32>
    %41 = tpu.matmul %38, %40, %cst_28 {dimension_numbers = #tpu.dot_dimension_numbers<[1], [0], [0], [1], [0, 0, 1, 1], [], []>} : vector<16x32xbf16>, vector<32x32xbf16>, vector<16x32xf32> -> vector<16x32xf32>
    %42 = vector.extract_strided_slice %5 {offsets = [5, 0], sizes = [1, 32], strides = [1, 1]} : vector<6x32xf32> to vector<1x32xf32>
    %43 = vector.broadcast %42 : vector<1x32xf32> to vector<16x32xf32>
    %44 = arith.addf %41, %43 : vector<16x32xf32>
    %45 = arith.addf %3, %44 : vector<16x32xf32>
    %46 = vector.extract_strided_slice %5 {offsets = [0, 0], sizes = [1, 32], strides = [1, 1]} : vector<6x32xf32> to vector<1x32xf32>
    %47 = vector.extract_strided_slice %5 {offsets = [1, 0], sizes = [1, 32], strides = [1, 1]} : vector<6x32xf32> to vector<1x32xf32>
    %cst_29 = arith.constant dense<0.000000e+00> : vector<16xf32>
    %48 = vector.multi_reduction <add>, %45, %cst_29 [1] : vector<16x32xf32> to vector<16xf32>
    %49 = vector.shape_cast %48 : vector<16xf32> to vector<16x1xf32>
    %cst_30 = arith.constant 3.200000e+01 : f32
    %50 = vector.broadcast %cst_30 : f32 to vector<16x1xf32>
    %51 = arith.divf %49, %50 : vector<16x1xf32>
    %52 = vector.broadcast %51 : vector<16x1xf32> to vector<16x32xf32>
    %53 = arith.subf %45, %52 : vector<16x32xf32>
    %54 = arith.mulf %53, %53 : vector<16x32xf32>
    %cst_31 = arith.constant dense<0.000000e+00> : vector<16xf32>
    %55 = vector.multi_reduction <add>, %54, %cst_31 [1] : vector<16x32xf32> to vector<16xf32>
    %56 = vector.shape_cast %55 : vector<16xf32> to vector<16x1xf32>
    %cst_32 = arith.constant 3.200000e+01 : f32
    %57 = vector.broadcast %cst_32 : f32 to vector<16x1xf32>
    %58 = arith.divf %56, %57 : vector<16x1xf32>
    %cst_33 = arith.constant 9.99999974E-6 : f32
    %59 = vector.broadcast %cst_33 : f32 to vector<16x1xf32>
    %60 = arith.addf %58, %59 : vector<16x1xf32>
    %61 = math.rsqrt %60 : vector<16x1xf32>
    %62 = vector.broadcast %61 : vector<16x1xf32> to vector<16x32xf32>
    %63 = arith.mulf %53, %62 : vector<16x32xf32>
    %64 = vector.broadcast %46 : vector<1x32xf32> to vector<16x32xf32>
    %65 = arith.mulf %63, %64 : vector<16x32xf32>
    %66 = vector.broadcast %47 : vector<1x32xf32> to vector<16x32xf32>
    %67 = arith.addf %65, %66 : vector<16x32xf32>
    %68 = arith.truncf %67 : vector<16x32xf32> to vector<16x32xbf16>
    %c0_34 = arith.constant 0 : index
    %c0_35 = arith.constant 0 : index
    %c0_36 = arith.constant 0 : index
    %69 = vector.load %arg13[%c0_34, %c0_35, %c0_36] : memref<1x32x2048xbf16, #tpu.memory_space<vmem>>, vector<1x32x2048xbf16>
    %70 = vector.shape_cast %69 : vector<1x32x2048xbf16> to vector<32x2048xbf16>
    %cst_37 = arith.constant dense<0.000000e+00> : vector<16x2048xf32>
    %71 = tpu.matmul %68, %70, %cst_37 {dimension_numbers = #tpu.dot_dimension_numbers<[1], [0], [0], [1], [0, 0, 1, 1], [], []>} : vector<16x32xbf16>, vector<32x2048xbf16>, vector<16x2048xf32> -> vector<16x2048xf32>
    %c0_38 = arith.constant 0 : index
    %c0_39 = arith.constant 0 : index
    %c0_40 = arith.constant 0 : index
    %72 = vector.load %arg14[%c0_38, %c0_39, %c0_40] : memref<1x1x2048xf32, #tpu.memory_space<vmem>>, vector<1x1x2048xf32>
    %73 = vector.shape_cast %72 : vector<1x1x2048xf32> to vector<1x2048xf32>
    %74 = vector.broadcast %73 : vector<1x2048xf32> to vector<16x2048xf32>
    %75 = arith.addf %71, %74 : vector<16x2048xf32>
    %cst_41 = arith.constant 0.000000e+00 : f32
    %76 = vector.broadcast %cst_41 : f32 to vector<16x2048xf32>
    %77 = arith.maximumf %75, %76 : vector<16x2048xf32>
    %78 = arith.truncf %77 : vector<16x2048xf32> to vector<16x2048xbf16>
    %c0_42 = arith.constant 0 : index
    %c0_43 = arith.constant 0 : index
    %c0_44 = arith.constant 0 : index
    %79 = vector.load %arg15[%c0_42, %c0_43, %c0_44] : memref<1x2048x32xbf16, #tpu.memory_space<vmem>>, vector<1x2048x32xbf16>
    %80 = vector.shape_cast %79 : vector<1x2048x32xbf16> to vector<2048x32xbf16>
    %cst_45 = arith.constant dense<0.000000e+00> : vector<16x32xf32>
    %81 = tpu.matmul %78, %80, %cst_45 {dimension_numbers = #tpu.dot_dimension_numbers<[1], [0], [0], [1], [0, 0, 1, 1], [], []>} : vector<16x2048xbf16>, vector<2048x32xbf16>, vector<16x32xf32> -> vector<16x32xf32>
    %82 = vector.extract_strided_slice %5 {offsets = [4, 0], sizes = [1, 32], strides = [1, 1]} : vector<6x32xf32> to vector<1x32xf32>
    %83 = vector.broadcast %82 : vector<1x32xf32> to vector<16x32xf32>
    %84 = arith.addf %81, %83 : vector<16x32xf32>
    %85 = arith.addf %67, %84 : vector<16x32xf32>
    %86 = vector.extract_strided_slice %5 {offsets = [2, 0], sizes = [1, 32], strides = [1, 1]} : vector<6x32xf32> to vector<1x32xf32>
    %87 = vector.extract_strided_slice %5 {offsets = [3, 0], sizes = [1, 32], strides = [1, 1]} : vector<6x32xf32> to vector<1x32xf32>
    %cst_46 = arith.constant dense<0.000000e+00> : vector<16xf32>
    %88 = vector.multi_reduction <add>, %85, %cst_46 [1] : vector<16x32xf32> to vector<16xf32>
    %89 = vector.shape_cast %88 : vector<16xf32> to vector<16x1xf32>
    %cst_47 = arith.constant 3.200000e+01 : f32
    %90 = vector.broadcast %cst_47 : f32 to vector<16x1xf32>
    %91 = arith.divf %89, %90 : vector<16x1xf32>
    %92 = vector.broadcast %91 : vector<16x1xf32> to vector<16x32xf32>
    %93 = arith.subf %85, %92 : vector<16x32xf32>
    %94 = arith.mulf %93, %93 : vector<16x32xf32>
    %cst_48 = arith.constant dense<0.000000e+00> : vector<16xf32>
    %95 = vector.multi_reduction <add>, %94, %cst_48 [1] : vector<16x32xf32> to vector<16xf32>
    %96 = vector.shape_cast %95 : vector<16xf32> to vector<16x1xf32>
    %cst_49 = arith.constant 3.200000e+01 : f32
    %97 = vector.broadcast %cst_49 : f32 to vector<16x1xf32>
    %98 = arith.divf %96, %97 : vector<16x1xf32>
    %cst_50 = arith.constant 9.99999974E-6 : f32
    %99 = vector.broadcast %cst_50 : f32 to vector<16x1xf32>
    %100 = arith.addf %98, %99 : vector<16x1xf32>
    %101 = math.rsqrt %100 : vector<16x1xf32>
    %102 = vector.broadcast %101 : vector<16x1xf32> to vector<16x32xf32>
    %103 = arith.mulf %93, %102 : vector<16x32xf32>
    %104 = vector.broadcast %86 : vector<1x32xf32> to vector<16x32xf32>
    %105 = arith.mulf %103, %104 : vector<16x32xf32>
    %106 = vector.broadcast %87 : vector<1x32xf32> to vector<16x32xf32>
    %107 = arith.addf %105, %106 : vector<16x32xf32>
    %c0_51 = arith.constant 0 : index
    %c0_52 = arith.constant 0 : index
    %108 = vector.load %arg21[%c0_51, %c0_52] : memref<16x32xf32, #tpu.memory_space<vmem>>, vector<16x32xf32>
    tpu.vector_store %arg21[%c0_51, %c0_52], %107 {strides = array<i32>} : memref<16x32xf32, #tpu.memory_space<vmem>>, vector<16x32xf32>,
    %c3_i32 = arith.constant 3 : i32
    %109 = arith.cmpi eq, %arg0, %c3_i32 : i32
    %110 = arith.extui %109 : i1 to i32
    %c0_i32_53 = arith.constant 0 : i32
    %111 = arith.cmpi ne, %110, %c0_i32_53 : i32
    scf.if %111 {
      %c0_54 = arith.constant 0 : index
      %c0_55 = arith.constant 0 : index
      %112 = vector.load %arg8[%c0_54, %c0_55] : memref<2x16xf32, #tpu.memory_space<vmem>>, vector<2x16xf32>
      %cst_56 = arith.constant dense<0.000000e+00> : vector<2x32xf32>
      %113 = tpu.matmul %112, %107, %cst_56 {dimension_numbers = #tpu.dot_dimension_numbers<[1], [0], [0], [1], [0, 0, 1, 1], [], []>} : vector<2x16xf32>, vector<16x32xf32>, vector<2x32xf32> -> vector<2x32xf32>
      %c0_57 = arith.constant 0 : index
      %c0_58 = arith.constant 0 : index
      %114 = vector.load %arg16[%c0_57, %c0_58] : memref<32x256xf32, #tpu.memory_space<vmem>>, vector<32x256xf32>
      %cst_59 = arith.constant dense<0.000000e+00> : vector<2x256xf32>
      %115 = tpu.matmul %113, %114, %cst_59 {dimension_numbers = #tpu.dot_dimension_numbers<[1], [0], [0], [1], [0, 0, 1, 1], [], []>} : vector<2x32xf32>, vector<32x256xf32>, vector<2x256xf32> -> vector<2x256xf32>
      %c0_60 = arith.constant 0 : index
      %c0_61 = arith.constant 0 : index
      %116 = vector.load %arg17[%c0_60, %c0_61] : memref<1x256xf32, #tpu.memory_space<vmem>>, vector<1x256xf32>
      %117 = vector.broadcast %116 : vector<1x256xf32> to vector<2x256xf32>
      %118 = arith.addf %115, %117 : vector<2x256xf32>
      %cst_62 = arith.constant 0.000000e+00 : f32
      %119 = vector.broadcast %cst_62 : f32 to vector<2x256xf32>
      %120 = arith.maximumf %118, %119 : vector<2x256xf32>
      %c0_63 = arith.constant 0 : index
      %c0_64 = arith.constant 0 : index
      %121 = vector.load %arg18[%c0_63, %c0_64] : memref<256x1xf32, #tpu.memory_space<vmem>>, vector<256x1xf32>
      %cst_65 = arith.constant dense<0.000000e+00> : vector<2x1xf32>
      %122 = tpu.matmul %120, %121, %cst_65 {dimension_numbers = #tpu.dot_dimension_numbers<[1], [0], [0], [1], [0, 0, 1, 1], [], []>} : vector<2x256xf32>, vector<256x1xf32>, vector<2x1xf32> -> vector<2x1xf32>
      %c0_66 = arith.constant 0 : index
      %c0_67 = arith.constant 0 : index
      %123 = vector.load %arg19[%c0_66, %c0_67] : memref<1x1xf32, #tpu.memory_space<vmem>>, vector<1x1xf32>
      %124 = vector.broadcast %123 : vector<1x1xf32> to vector<2x1xf32>
      %125 = arith.addf %122, %124 : vector<2x1xf32>
      %c0_68 = arith.constant 0 : index
      %c0_69 = arith.constant 0 : index
      %126 = vector.load %arg20[%c0_68, %c0_69] : memref<2x1xf32, #tpu.memory_space<vmem>>, vector<2x1xf32>
      tpu.vector_store %arg20[%c0_68, %c0_69], %125 {strides = array<i32>} : memref<2x1xf32, #tpu.memory_space<vmem>>, vector<2x1xf32>,
    } else {
    }
    return
  }
  func.func @transform_0(%arg0: i32) -> (i32, i32) {
    %c0_i32 = arith.constant 0 : i32
    %c0_i32_0 = arith.constant 0 : i32
    %c0_i32_1 = arith.constant 0 : i32
    return %c0_i32, %c0_i32_0 : i32, i32
  }
  func.func @transform_1(%arg0: i32) -> (i32, i32) {
    %c0_i32 = arith.constant 0 : i32
    %c0_i32_0 = arith.constant 0 : i32
    %c0_i32_1 = arith.constant 0 : i32
    return %c0_i32, %c0_i32_0 : i32, i32
  }
  func.func @transform_2(%arg0: i32) -> (i32, i32) {
    %c0_i32 = arith.constant 0 : i32
    %c0_i32_0 = arith.constant 0 : i32
    %c0_i32_1 = arith.constant 0 : i32
    return %c0_i32, %c0_i32_0 : i32, i32
  }
  func.func @transform_3(%arg0: i32) -> (i32, i32) {
    %c0_i32 = arith.constant 0 : i32
    %c0_i32_0 = arith.constant 0 : i32
    %c0_i32_1 = arith.constant 0 : i32
    return %c0_i32, %c0_i32_0 : i32, i32
  }
  func.func @transform_4(%arg0: i32) -> (i32, i32) {
    %c0_i32 = arith.constant 0 : i32
    %c0_i32_0 = arith.constant 0 : i32
    %c0_i32_1 = arith.constant 0 : i32
    return %c0_i32, %c0_i32_0 : i32, i32
  }
  func.func @transform_5(%arg0: i32) -> (i32, i32) {
    %c0_i32 = arith.constant 0 : i32
    %c0_i32_0 = arith.constant 0 : i32
    %c0_i32_1 = arith.constant 0 : i32
    return %c0_i32, %c0_i32_0 : i32, i32
  }
  func.func @transform_6(%arg0: i32) -> (i32, i32) {
    %c0_i32 = arith.constant 0 : i32
    %c0_i32_0 = arith.constant 0 : i32
    %c0_i32_1 = arith.constant 0 : i32
    return %c0_i32, %c0_i32_0 : i32, i32
  }
  func.func @transform_7(%arg0: i32) -> (i32, i32) {
    %c0_i32 = arith.constant 0 : i32
    %c0_i32_0 = arith.constant 0 : i32
    %c0_i32_1 = arith.constant 0 : i32
    return %c0_i32, %c0_i32_0 : i32, i32
  }
  func.func @transform_8(%arg0: i32) -> (i32, i32, i32) {
    %c0_i32 = arith.constant 0 : i32
    %c0_i32_0 = arith.constant 0 : i32
    %c0_i32_1 = arith.constant 0 : i32
    return %arg0, %c0_i32, %c0_i32_0 : i32, i32, i32
  }
  func.func @transform_9(%arg0: i32) -> (i32, i32, i32) {
    %c0_i32 = arith.constant 0 : i32
    %c0_i32_0 = arith.constant 0 : i32
    %c0_i32_1 = arith.constant 0 : i32
    return %arg0, %c0_i32, %c0_i32_0 : i32, i32, i32
  }
  func.func @transform_10(%arg0: i32) -> (i32, i32, i32) {
    %c0_i32 = arith.constant 0 : i32
    %c0_i32_0 = arith.constant 0 : i32
    %c0_i32_1 = arith.constant 0 : i32
    return %arg0, %c0_i32, %c0_i32_0 : i32, i32, i32
  }
  func.func @transform_11(%arg0: i32) -> (i32, i32, i32) {
    %c0_i32 = arith.constant 0 : i32
    %c0_i32_0 = arith.constant 0 : i32
    %c0_i32_1 = arith.constant 0 : i32
    return %arg0, %c0_i32, %c0_i32_0 : i32, i32, i32
  }
  func.func @transform_12(%arg0: i32) -> (i32, i32, i32) {
    %c0_i32 = arith.constant 0 : i32
    %c0_i32_0 = arith.constant 0 : i32
    %c0_i32_1 = arith.constant 0 : i32
    return %arg0, %c0_i32, %c0_i32_0 : i32, i32, i32
  }
  func.func @transform_13(%arg0: i32) -> (i32, i32, i32) {
    %c0_i32 = arith.constant 0 : i32
    %c0_i32_0 = arith.constant 0 : i32
    %c0_i32_1 = arith.constant 0 : i32
    return %arg0, %c0_i32, %c0_i32_0 : i32, i32, i32
  }
  func.func @transform_14(%arg0: i32) -> (i32, i32, i32) {
    %c0_i32 = arith.constant 0 : i32
    %c0_i32_0 = arith.constant 0 : i32
    %c0_i32_1 = arith.constant 0 : i32
    return %arg0, %c0_i32, %c0_i32_0 : i32, i32, i32
  }
  func.func @transform_15(%arg0: i32) -> (i32, i32) {
    %c0_i32 = arith.constant 0 : i32
    %c0_i32_0 = arith.constant 0 : i32
    %c0_i32_1 = arith.constant 0 : i32
    return %c0_i32, %c0_i32_0 : i32, i32
  }
  func.func @transform_16(%arg0: i32) -> (i32, i32) {
    %c0_i32 = arith.constant 0 : i32
    %c0_i32_0 = arith.constant 0 : i32
    %c0_i32_1 = arith.constant 0 : i32
    return %c0_i32, %c0_i32_0 : i32, i32
  }
  func.func @transform_17(%arg0: i32) -> (i32, i32) {
    %c0_i32 = arith.constant 0 : i32
    %c0_i32_0 = arith.constant 0 : i32
    %c0_i32_1 = arith.constant 0 : i32
    return %c0_i32, %c0_i32_0 : i32, i32
  }
  func.func @transform_18(%arg0: i32) -> (i32, i32) {
    %c0_i32 = arith.constant 0 : i32
    %c0_i32_0 = arith.constant 0 : i32
    %c0_i32_1 = arith.constant 0 : i32
    return %c0_i32, %c0_i32_0 : i32, i32
  }
  func.func @transform_19(%arg0: i32) -> (i32, i32) {
    %c0_i32 = arith.constant 0 : i32
    %c0_i32_0 = arith.constant 0 : i32
    %c0_i32_1 = arith.constant 0 : i32
    return %c0_i32, %c0_i32_0 : i32, i32
  }
}

</mosaic_0001>

<bundles_post_ra>
// kernel: critic_forward.1
= control target key start
LH: loop header
LB: loop body
LE: loop exit
PB: predicated region body
PF: predicated region fallthrough
CT: control target
= control target key end

     0   :  { %s5924_s20 = smov 0   ;;  %s7038_s0 = inlined_call_operand.vmem [shape: bf16[16,40], index: 0, kind: input, shape index: {}]   ;;  %s7039_s1 = inlined_call_operand.vmem [shape: bf16[40,32], index: 1, kind: input, shape index: {}]   ;;  %s7040_s2 = inlined_call_operand.vmem [shape: f32[48,32], index: 2, kind: input, shape index: {}]   ;;  %s7041_s3 = inlined_call_operand.vmem [shape: f32[128,16], index: 3, kind: input, shape index: {}]   ;;  %s7042_s4 = inlined_call_operand.vmem [shape: f32[16,128], index: 4, kind: input, shape index: {}]   ;;  %s7043_s5 = inlined_call_operand.vmem [shape: f32[128,32], index: 5, kind: input, shape index: {}]   ;;  %s7044_s6 = inlined_call_operand.vmem [shape: f32[128,128], index: 6, kind: input, shape index: {}]   ;;  %s7045_s7 = inlined_call_operand.vmem [shape: f32[2,16], index: 7, kind: input, shape index: {}]   ;;  %s7046_s8 = inlined_call_operand.vmem [shape: bf16[4,32,96], index: 8, kind: input, shape index: {}]   ;;  %s7047_s9 = inlined_call_operand.vmem [shape: f32[4,1,96], index: 9, kind: input, shape index: {}]   ;;  %s7048_s10 = inlined_call_operand.vmem [shape: bf16[4,32,32], index: 10, kind: input, shape index: {}]   ;;  %s7049_s11 = inlined_call_operand.vmem [shape: f32[4,6,32], index: 11, kind: input, shape index: {}]   ;;  %s7050_s12 = inlined_call_operand.vmem [shape: bf16[4,32,2048], index: 12, kind: input, shape index: {}]   ;;  %s7051_s13 = inlined_call_operand.vmem [shape: f32[4,1,2048], index: 13, kind: input, shape index: {}]   ;;  %s7052_s14 = inlined_call_operand.vmem [shape: bf16[4,2048,32], index: 14, kind: input, shape index: {}]   ;;  %s7053_s15 = inlined_call_operand.vmem [shape: f32[32,256], index: 15, kind: input, shape index: {}]   ;;  %s7054_s16 = inlined_call_operand.vmem [shape: f32[1,256], index: 16, kind: input, shape index: {}]   ;;  %s7055_s17 = inlined_call_operand.vmem [shape: f32[256,1], index: 17, kind: input, shape index: {}]   ;;  %s7056_s18 = inlined_call_operand.<no memory space> [shape: f32[1,1], index: 18, kind: input, shape index: {}]   ;;  %s7057_s19 = inlined_call_operand.vmem [shape: f32[2,1], index: 19, kind: output, shape index: {}]  }
   0x1   :  { %7062 = sst [smem:[#allocation5_spill]] %s7038_s0  ;;  %v24_v0 = vstv %s7056_s18 }
   0x2   :  { %7063 = sst [smem:[#allocation6_spill]] %s7039_s1  ;;  %25 = vst [vmem:[#allocation3] sm:$0x1] %v24_v0 }
   0x3   :  { %7064 = sst [smem:[#allocation7_spill]] %s7040_s2 }
   0x4   :  { %7065 = sst [smem:[#allocation8_spill]] %s7041_s3 }
   0x5   :  { %7066 = sst [smem:[#allocation9_spill]] %s7046_s8 }
   0x6   :  { %7067 = sst [smem:[#allocation10_spill]] %s7048_s10 }
   0x7   :  { %7068 = sst [smem:[#allocation11_spill]] %s7054_s16 }
   0x8   :  { %7069 = sst [smem:[#allocation12_spill]] %s7057_s19 }
   0x9 LB: > { %7070 = sst [smem:[#allocation4_spill]] %s5808_s20  ;;  %s5930_s21 = sadd.s32 4294967295, %s5808_s20   ;;  %s5808_s20 = sphi %s5924_s20, %s31_s20  }
   0xa   : > { %p4547_p0 = scmp.ge.s32.totalorder %s5808_s20, 1  ;;  %p590_p1 = scmp.lt.s32.totalorder %s5808_s20, 5 }
   0xc   : > { %p591_p2 = pnand %p4547_p0, %p590_p1 }
   0xd   : > { %p667_p3 = scmp.lt.s32.totalorder (!%p591_p2), %s5930_s21, 3  ;;  %s7071_s8 = sld [smem:[#allocation9_spill]] (!%p591_p2) }
   0xe   : > { %594 = sbr.rel (%p591_p2) target bundleno = 4294 (0x10c6), region = 96  ;;  %s7072_s10 = sld [smem:[#allocation10_spill]] (!%p591_p2) }
   0xf   : > { %p4558_p4 = scmp.ne.s32.totalorder (!%p591_p2), %s5930_s21, 0 }
  0x15   : > { %s5936_s18 = scalar_select %p667_p3, %s5930_s21, 3 }
  0x16   : > { %702 = sbr.rel (%p4558_p4) target bundleno = 573 (0x23d), region = 100  ;;  %s7073_s30 = sld [smem:[#allocation6_spill]] (!%p4558_p4)  ;;  %v5810_v2 = vmov (!%p4558_p4), 0.0   ;;  %vm5811_vm0 = vmmov (!%p4558_p4), 0   ;;  %vm734_vm1 = vcmask (!%p4558_p4), 1043456   ;;  %vm730_vm2 = vcmask (!%p4558_p4), 326656  }
  0x17   : > { %s4793_s1 = sshll.u32 %s5936_s18, 4  ;;  %s4552_s29 = sshll.u32 %s5936_s18, 3  ;;  %5121 = vmatprep.subr.bf16.mxu0 (!%p4558_p4), %v5810_v2  ;;  %5127 = vmatprep.mubr.msk.bf16.mxu0 (!%p4558_p4), %vm5811_vm0, %v5810_v2  ;;  %vm785_vm3 = vcmask (!%p4558_p4), 261120  }
  0x18   : > { %s5946_s3 = scalar_lea.vmem %s7071_s8, %s4793_s1  ;;  %s5951_s28 = scalar_lea.vmem %s7072_s10, %s4793_s1 }
  0x19   : > { %s4795_s0 = sshll.u32 %s5936_s18, 8  ;;  %s5958_s19 = scalar_lea.vmem %s7049_s11, %s4552_s29 }
  0x1a   : > { %s5963_s2 = scalar_lea.vmem %s7050_s12, %s4795_s0  ;;  %s5968_s23 = scalar_lea.vmem %s7051_s13, %s4793_s1 }
  0x1b   : > { %s4796_s26 = sshll.u32 %s5936_s18, 10  ;;  %s7074_s25 = sld [smem:[#allocation5_spill]] (!%p4558_p4) }
  0x1c   : > { %s5974_s10 = scalar_lea.vmem %s7052_s14, %s4796_s26  ;;  %v5507_v1 = vld [vmem:[%s7073_s30] sm:$0xff] (!%p4558_p4)   ;;  %v5508_v3 = vld [vmem:[%s7073_s30 + $0x8] sm:$0xff] (!%p4558_p4)   ;;  %v5509_v4 = vld [vmem:[%s7073_s30 + $0x10] ss:$0 sps:$4 sm:$0xff] (!%p4558_p4)   ;;  %s7075_s20 = sld [smem:[#allocation7_spill]] (!%p4558_p4) }
  0x1d   : > { %5122 = vmatpush3.bf16.msra.mxu0 %v5507_v1  ;;  %v736_v5 = vsel %vm734_vm1, %v5509_v4, 0 }
  0x1e   : > { %5123 = vmatprep.subr.bf16.mxu0 %v5810_v2 }
  0x21   : > { %5124 = vmatpush3.bf16.msra.mxu0 %v5508_v3  ;;  %v5510_v6 = vld [vmem:[%s7074_s25] sm:$0xff]  }
  0x22   : > { %5125 = vmatprep.subr.bf16.mxu0 %v5810_v2  ;;  %s7076_s29 = smov %s7075_s20  ;;  %v779_v30 = vld [vmem:[%s7075_s20] sm:$0xff] }
  0x23   : > { %v783_v31 = vld [vmem:[%s7076_s29 + $0x20] sm:$0xff]  ;;  %v781_v33 = vld [vmem:[%s7076_s29 + $0x10] sm:$0xff]  ;;  %v780_v36 = vld [vmem:[%s7076_s29 + $0x8] sm:$0xff] }
  0x24   : > { %vm817_vm4 = vcmp.gt.f32.partialorder %v783_v31, 0.5  ;;  %v784_v38 = vld [vmem:[%s7076_s29 + $0x28] sm:$0xff]  ;;  %v782_v40 = vld [vmem:[%s7076_s29 + $0x18] sm:$0xff] }
  0x25   : > { %5126 = vmatpush3.bf16.msra.mxu0 %v736_v5  ;;  %vm818_vm5 = vcmp.gt.f32.partialorder %v784_v38, 0.5 }
  0x28   : > { %5128 = vmatmul.mubr.msk.bf16.vlgmr.msra.gmra.mrb[0].mxu0 %vm730_vm2, %v5510_v6 }
  0xfb   : > { %v772_v7 = vpop.f32.mrb[0].mxu0 }
  0xfc   : > { %v5129_v8 = vpop.f32.mrb[1].mxu0  ;;  %v786_v9 = vsel %vm785_vm3, %v772_v7, 0.0 }
  0xfd   : > { %787 = vadd.xlane.f32.xlu0 %v786_v9  ;;  %v775_v10 = vpop.f32.mrb[2].mxu0 }
  0xfe   : > { %v5130_v11 = vpop.f32.mrb[3].mxu0  ;;  %v789_v12 = vsel %vm785_vm3, %v775_v10, 0.0 }
 0x101   : > { %790 = vadd.xlane.f32.xlu0 %v789_v12 }
 0x18a   : > { %v788_v13 = vpop.xlane.xlu0 %787 }
 0x18b   : > { %v793_v14 = vmul.f32 0.03125, %v788_v13 }
 0x18d   : > { %v795_v15 = vsub.f32 %v772_v7, %v793_v14 }
 0x18e   : > { %v791_v16 = vpop.xlane.xlu0 %790 }
 0x18f   : > { %v794_v17 = vmul.f32 0.03125, %v791_v16  ;;  %v797_v18 = vmul.f32 %v795_v15, %v795_v15 }
 0x191   : > { %v796_v19 = vsub.f32 %v775_v10, %v794_v17  ;;  %v799_v20 = vsel %vm785_vm3, %v797_v18, 0.0 }
 0x192   : > { %800 = vadd.xlane.f32.xlu1 %v799_v20 }
 0x193   : > { %v798_v21 = vmul.f32 %v796_v19, %v796_v19 }
 0x195   : > { %v802_v22 = vsel %vm785_vm3, %v798_v21, 0.0 }
 0x196   : > { %803 = vadd.xlane.f32.xlu1 %v802_v22 }
 0x21f   : > { %v801_v23 = vpop.xlane.xlu1 %800 }
 0x220   : > { %v805_v24 = vmul.f32 0.03125, %v801_v23 }
 0x222   : > { %v807_v25 = vadd.f32 1e-05, %v805_v24 }
 0x223   : > { %v804_v26 = vpop.xlane.xlu1 %803 }
 0x224   : > { %5511 = vrsqrt.f32 %v807_v25  ;;  %v806_v27 = vmul.f32 0.03125, %v804_v26 }
 0x226   : > { %v808_v28 = vadd.f32 1e-05, %v806_v27 }
 0x228   : > { %5513 = vrsqrt.f32 %v808_v28 }
 0x22e   : > { %v5512_v29 = vpop.eup %5511 }
 0x22f   : > { %v811_v32 = vmul.f32 %v5512_v29, %v795_v15 }
 0x231   : > { %v813_v34 = vmul.f32 %v811_v32, %v779_v30 }
 0x232   : > { %v5514_v35 = vpop.eup %5513 }
 0x233   : > { %v815_v37 = vadd.f32 %v813_v34, %v781_v33  ;;  %v812_v39 = vmul.f32 %v5514_v35, %v796_v19 }
 0x235   : > { %v819_v41 = vsel %vm817_vm4, %v815_v37, %v772_v7  ;;  %v814_v42 = vmul.f32 %v812_v39, %v780_v36 }
 0x236   : > { %v821_v43 = vmax.f32 %v819_v41, 0.0 }
 0x237   : > { %v816_v44 = vadd.f32 %v814_v42, %v782_v40 }
 0x238   : > { %823 = vst.msk [vmem:[#allocation2] sm:$0xff] %vm785_vm3, %v821_v43 }
 0x239   : > { %v820_v45 = vsel %vm818_vm5, %v816_v44, %v775_v10 }
 0x23a   : > { %v822_v46 = vmax.f32 %v820_v45, 0.0 }
 0x23c   : > { %824 = vst.msk [vmem:[#allocation2 + $0x8] sm:$0xff] %vm785_vm3, %v822_v46 }
 0x23d PF: > { %v5595_v47 = vld [vmem:[%s5946_s3] sm:$0xff]   ;;  %v5812_v48 = vmov 0.0   ;;  %v5596_v49 = vld [vmem:[%s5946_s3 + $0x8] sm:$0xff]   ;;  %vm5813_vm6 = vmmov 0   ;;  %vm852_vm7 = vcmask 261120   ;;  %s7077_s1 = sld [smem:[#allocation8_spill]]  ;;  %s7078_s16 = scalar_lea.vmem %s7047_s9, %s5936_s18 }
 0x23e   : > { %5131 = vmatprep.subr.bf16.mxu0 %v5812_v48  ;;  %5135 = vmatprep.mubr.msk.bf16.mxu0 %vm5813_vm6, %v5812_v48  ;;  %vm913_vm8 = vcmask 130048   ;;  %v6027_v54 = vld [vmem:[%s7043_s5] sm:$0xff]  ;;  %v6032_v55 = vld [vmem:[%s7043_s5 + $0x10] sm:$0xff]  ;;  %s5814_s25 = smov 32   ;;  %v6039_v56 = vld [vmem:[%s7043_s5 + $0x8] sm:$0xff]  ;;  %s5815_s27 = smov 96  }
 0x23f   : > { %5132 = vmatpush3.bf16.msra.mxu0 %v5595_v47  ;;  %v825_v50 = vld [vmem:[#allocation2] sm:$0xff]  ;;  %1139 = vrot.lane.b32.xlu0 %v6027_v54, %s5814_s25  ;;  %v6044_v57 = vld [vmem:[%s7043_s5 + $0x18] sm:$0xff]  ;;  %v6051_v58 = vld [vmem:[%s7043_s5 + $0x28] sm:$0xff]  ;;  %s5816_s20 = smov 64   ;;  %p4787_p5 = scmp.ne.s32.totalorder %s5930_s21, 3 }
 0x240   : > { %5133 = vmatprep.subr.bf16.mxu0 %v5812_v48  ;;  %1143 = vrot.lane.b32.xlu1 %v6032_v55, %s5814_s25  ;;  %v6056_v59 = vld [vmem:[%s7043_s5 + $0x20] sm:$0xff]  ;;  %v6063_v60 = vld [vmem:[%s7043_s5 + $0x38] sm:$0xff]  ;;  %v6068_v61 = vld [vmem:[%s7043_s5 + $0x30] sm:$0xff]  ;;  %vm5819_vm10 = vmmov (!%p4787_p5), 0   ;;  %vm4445_vm11 = vcmask (!%p4787_p5), 1024  }
 0x241   : > { %v6075_v62 = vld [vmem:[%s7043_s5 + $0x48] sm:$0xff]  ;;  %v6080_v63 = vld [vmem:[%s7043_s5 + $0x40] sm:$0xff]  ;;  %v6087_v0 = vld [vmem:[%s7043_s5 + $0x58] sm:$0xff] }
 0x242   : > { %v6092_v1 = vld [vmem:[%s7043_s5 + $0x50] sm:$0xff]  ;;  %v6099_v2 = vld [vmem:[%s7043_s5 + $0x68] sm:$0xff]  ;;  %v6104_v3 = vld [vmem:[%s7043_s5 + $0x60] sm:$0xff] }
 0x243   : > { %v826_v51 = vld [vmem:[#allocation2 + $0x8] sm:$0xff]  ;;  %5134 = vmatpush3.bf16.msra.mxu0 %v5596_v49  ;;  %v897_v53 = vld [vmem:[%s7077_s1] sm:$0xff]  ;;  %1141 = vrot.lane.b32.xlu0 %v6039_v56, %s5814_s25  ;;  %v6111_v4 = vld [vmem:[%s7043_s5 + $0x78] sm:$0xff] }
 0x244   : > { %v828_v52 = vpack.c.bf16 %v826_v51, %v825_v50  ;;  %5143 = vmatprep.mubr.msk.f32.mxu1 %vm913_vm8, %v897_v53  ;;  %1145 = vrot.lane.b32.xlu1 %v6044_v57, %s5814_s25  ;;  %v6116_v5 = vld [vmem:[%s7043_s5 + $0x70] sm:$0xff]  ;;  %v4564_v6 = vld [vmem:[%s7078_s16] ss:$0 sm:$0xff]  ;;  %v898_v14 = vld [vmem:[%s7077_s1 + $0x8] sm:$0xff] }
 0x245   : > { %v899_v15 = vld [vmem:[%s7077_s1 + $0x10] sm:$0xff]  ;;  %v900_v16 = vld [vmem:[%s7077_s1 + $0x18] sm:$0xff]  ;;  %v901_v17 = vld [vmem:[%s7077_s1 + $0x20] sm:$0xff] }
 0x246   : > { %5136 = vmatmul.mubr.msk.bf16.vlgmr.msra.gmra.mrb[0].mxu0 %vm852_vm7, %v828_v52  ;;  %v902_v18 = vld [vmem:[%s7077_s1 + $0x28] sm:$0xff]  ;;  %v903_v19 = vld [vmem:[%s7077_s1 + $0x30] sm:$0xff]  ;;  %v904_v20 = vld [vmem:[%s7077_s1 + $0x38] sm:$0xff] }
 0x247   : > { %1147 = vrot.lane.b32.xlu0 %v6056_v59, %s5814_s25  ;;  %v905_v21 = vld [vmem:[%s7077_s1 + $0x40] sm:$0xff]  ;;  %v906_v22 = vld [vmem:[%s7077_s1 + $0x48] sm:$0xff]  ;;  %v907_v23 = vld [vmem:[%s7077_s1 + $0x50] sm:$0xff] }
 0x248   : > { %1149 = vrot.lane.b32.xlu1 %v6051_v58, %s5814_s25  ;;  %v908_v24 = vld [vmem:[%s7077_s1 + $0x58] sm:$0xff]  ;;  %v909_v25 = vld [vmem:[%s7077_s1 + $0x60] sm:$0xff]  ;;  %v910_v26 = vld [vmem:[%s7077_s1 + $0x68] sm:$0xff] }
 0x249   : > { %v911_v27 = vld [vmem:[%s7077_s1 + $0x70] sm:$0xff]  ;;  %v912_v28 = vld [vmem:[%s7077_s1 + $0x78] sm:$0xff]  ;;  %vm6277_vm9 = vmpackc.low %vm852_vm7, %vm852_vm7 }
 0x24b   : > { %1151 = vrot.lane.b32.xlu0 %v6068_v61, %s5814_s25 }
 0x24c   : > { %1153 = vrot.lane.b32.xlu1 %v6063_v60, %s5814_s25 }
 0x24f   : > { %1155 = vrot.lane.b32.xlu0 %v6080_v63, %s5814_s25 }
 0x250   : > { %1157 = vrot.lane.b32.xlu1 %v6075_v62, %s5814_s25 }
 0x253   : > { %1159 = vrot.lane.b32.xlu0 %v6092_v1, %s5814_s25 }
 0x254   : > { %1161 = vrot.lane.b32.xlu1 %v6087_v0, %s5814_s25 }
 0x257   : > { %1163 = vrot.lane.b32.xlu0 %v6104_v3, %s5814_s25 }
 0x258   : > { %1165 = vrot.lane.b32.xlu1 %v6099_v2, %s5814_s25 }
 0x25b   : > { %1167 = vrot.lane.b32.xlu0 %v6116_v5, %s5814_s25 }
 0x25c   : > { %1169 = vrot.lane.b32.xlu1 %v6111_v4, %s5814_s25  ;;  %s7081_s25 = sld [smem:[#allocation11_spill]] (!%p4787_p5) }
 0x2b1   : > { %v1140_v30 = vpop.permute.xlu0 %1139 }
 0x2b2   : > { %v1144_v29 = vpop.permute.xlu1 %1143 }
 0x2b5   : > { %v1142_v32 = vpop.permute.xlu0 %1141 }
 0x2b6   : > { %v1146_v31 = vpop.permute.xlu1 %1145 }
 0x2b9   : > { %v1148_v34 = vpop.permute.xlu0 %1147 }
 0x2ba   : > { %v1150_v33 = vpop.permute.xlu1 %1149 }
 0x2bd   : > { %v1152_v40 = vpop.permute.xlu0 %1151 }
 0x2be   : > { %v1154_v39 = vpop.permute.xlu1 %1153 }
 0x2c1   : > { %v1156_v52 = vpop.permute.xlu0 %1155 }
 0x2c2   : > { %v1158_v49 = vpop.permute.xlu1 %1157 }
 0x319   : > { %v890_v7 = vpop.f32.mrb[0].mxu0 }
 0x31a   : > { %v5137_v8 = vpop.f32.mrb[1].mxu0  ;;  %v891_v10 = vadd.f32 %v4564_v6, %v890_v7 }
 0x31b   : > { %v893_v9 = vpop.f32.mrb[2].mxu0 }
 0x31c   : > { %v894_v11 = vadd.f32 %v4564_v6, %v893_v9  ;;  %v5138_v12 = vpop.f32.mrb[3].mxu0 }
 0x31d   : > { %v1160_v12 = vpop.permute.xlu0 %1159 }
 0x31e   : > { %v5329_v13 = vpack.c.bf16 %v894_v11, %v891_v10  ;;  %v1162_v11 = vpop.permute.xlu1 %1161 }
 0x320   : > { %5330 = vmatprep.subr.bf16.mxu1 %v5329_v13 }
 0x321   : > { %5332 = vmatpush3.bf16.msra.mxu1 %v5329_v13 }
 0x324   : > { %5144 = vmatmul.mubr.msk.f32.vlgmr.msra.gmra.mrb[0].mxu1 %vm913_vm8, %v898_v14 }
 0x325   : > { %5146 = vmatprep.mubr.msk.f32.mxu1 %vm913_vm8, %v899_v15 }
 0x328   : > { %5147 = vmatmul.mubr.msk.f32.gmra.mrb[2].mxu1 %vm913_vm8, %v900_v16 }
 0x329   : > { %5149 = vmatprep.mubr.msk.f32.mxu1 %vm913_vm8, %v901_v17 }
 0x32c   : > { %5150 = vmatmul.mubr.msk.f32.gmra.mrb[4].mxu1 %vm913_vm8, %v902_v18 }
 0x32d   : > { %5152 = vmatprep.mubr.msk.f32.mxu1 %vm913_vm8, %v903_v19  ;;  %v1166_v19 = vpop.permute.xlu1 %1165 }
 0x330   : > { %5153 = vmatmul.mubr.msk.f32.gmra.mrb[6].mxu1 %vm913_vm8, %v904_v20 }
 0x331   : > { %5155 = vmatprep.mubr.msk.f32.mxu1 %vm913_vm8, %v905_v21 }
 0x334   : > { %5156 = vmatmul.mubr.msk.f32.gmra.mrb[8].mxu1 %vm913_vm8, %v906_v22 }
 0x335   : > { %5158 = vmatprep.mubr.msk.f32.mxu1 %vm913_vm8, %v907_v23  ;;  %v1164_v23 = vpop.permute.xlu0 %1163 }
 0x338   : > { %5159 = vmatmul.mubr.msk.f32.gmra.mrb[10].mxu1 %vm913_vm8, %v908_v24 }
 0x339   : > { %5161 = vmatprep.mubr.msk.f32.mxu1 %vm913_vm8, %v909_v25 }
 0x33c   : > { %5162 = vmatmul.mubr.msk.f32.gmra.mrb[12].mxu1 %vm913_vm8, %v910_v26 }
 0x33d   : > { %5164 = vmatprep.mubr.msk.f32.mxu1 %vm913_vm8, %v911_v27 }
 0x340   : > { %5165 = vmatmul.mubr.msk.f32.gmra.mrb[14].mxu1 %vm913_vm8, %v912_v28 }
 0x3f7   : > { %v6185_v35 = vpop.f32.mrb[0].mxu1 }
 0x3f8   : > { %v1188_v36 = vmul.f32 %v6185_v35, %v1142_v32  ;;  %v6188_v37 = vpop.f32.mrb[1].mxu1 }
 0x3f9   : > { %v1187_v38 = vmul.f32 %v1140_v30, %v6188_v37  ;;  %5199 = vmatprep.mubr.msk.f32.mxu1 %vm852_vm7, %v6188_v37  ;;  %v1170_v30 = vpop.permute.xlu1 %1169 }
 0x3fb   : > { %v6193_v41 = vpop.f32.mrb[2].mxu1  ;;  %v5515_v42 = vpack.i.bf16 %v1188_v36, %v1187_v38 }
 0x3fc   : > { %v1190_v43 = vmul.f32 %v6193_v41, %v1146_v31  ;;  %v6196_v44 = vpop.f32.mrb[3].mxu1  ;;  %v1168_v31 = vpop.permute.xlu0 %1167 }
 0x3fd   : > { %v1189_v45 = vmul.f32 %v1144_v29, %v6196_v44  ;;  %5516 = vrot.lane.b32.xlu0 %v5515_v42, %s5815_s27 }
 0x3ff   : > { %v5520_v46 = vpack.i.bf16 %v1190_v43, %v1189_v45  ;;  %v6200_v47 = vpop.f32.mrb[4].mxu1 }
 0x400   : > { %v1192_v50 = vmul.f32 %v6200_v47, %v1150_v33  ;;  %v6203_v51 = vpop.f32.mrb[5].mxu1 }
 0x401   : > { %5521 = vrot.lane.b32.xlu1 %v5520_v46, %s5815_s27  ;;  %v1191_v53 = vmul.f32 %v1148_v34, %v6203_v51 }
 0x403   : > { %v6207_v6 = vpop.f32.mrb[6].mxu1  ;;  %v5525_v7 = vpack.i.bf16 %v1192_v50, %v1191_v53 }
 0x404   : > { %v1194_v8 = vmul.f32 %v6207_v6, %v1154_v39  ;;  %v6210_v9 = vpop.f32.mrb[7].mxu1 }
 0x405   : > { %v1193_v10 = vmul.f32 %v1152_v40, %v6210_v9  ;;  %5526 = vrot.lane.b32.xlu0 %v5525_v7, %s5815_s27 }
 0x407   : > { %v6214_v13 = vpop.f32.mrb[8].mxu1  ;;  %v5530_v14 = vpack.i.bf16 %v1194_v8, %v1193_v10 }
 0x408   : > { %v1196_v15 = vmul.f32 %v6214_v13, %v1158_v49  ;;  %v6217_v16 = vpop.f32.mrb[9].mxu1 }
 0x409   : > { %v1195_v17 = vmul.f32 %v1156_v52, %v6217_v16  ;;  %5531 = vrot.lane.b32.xlu1 %v5530_v14, %s5815_s27 }
 0x40b   : > { %v6221_v18 = vpop.f32.mrb[10].mxu1  ;;  %v5535_v20 = vpack.i.bf16 %v1196_v15, %v1195_v17 }
 0x40c   : > { %v1198_v21 = vmul.f32 %v6221_v18, %v1162_v11  ;;  %v6224_v22 = vpop.f32.mrb[11].mxu1 }
 0x40d   : > { %v1197_v24 = vmul.f32 %v1160_v12, %v6224_v22  ;;  %5536 = vrot.lane.b32.xlu0 %v5535_v20, %s5815_s27 }
 0x40f   : > { %v6228_v25 = vpop.f32.mrb[12].mxu1  ;;  %v5540_v26 = vpack.i.bf16 %v1198_v21, %v1197_v24 }
 0x410   : > { %v1200_v27 = vmul.f32 %v6228_v25, %v1166_v19  ;;  %v6231_v28 = vpop.f32.mrb[13].mxu1 }
 0x411   : > { %v1199_v29 = vmul.f32 %v1164_v23, %v6231_v28  ;;  %5541 = vrot.lane.b32.xlu1 %v5540_v26, %s5815_s27 }
 0x413   : > { %v6235_v32 = vpop.f32.mrb[14].mxu1  ;;  %v5545_v33 = vpack.i.bf16 %v1200_v27, %v1199_v29 }
 0x414   : > { %v1202_v34 = vmul.f32 %v6235_v32, %v1170_v30  ;;  %v6238_v36 = vpop.f32.mrb[15].mxu1 }
 0x415   : > { %v1201_v38 = vmul.f32 %v1168_v31, %v6238_v36  ;;  %5546 = vrot.lane.b32.xlu0 %v5545_v33, %s5815_s27 }
 0x417   : > { %v5550_v39 = vpack.i.bf16 %v1202_v34, %v1201_v38 }
 0x419   : > { %1203 = vrot.lane.b32.xlu0 %v6027_v54, %s5816_s20  ;;  %5551 = vrot.lane.b32.xlu1 %v5550_v39, %s5815_s27 }
 0x41d   : > { %1207 = vrot.lane.b32.xlu0 %v6032_v55, %s5816_s20  ;;  %1205 = vrot.lane.b32.xlu1 %v6039_v56, %s5816_s20 }
 0x421   : > { %1211 = vrot.lane.b32.xlu0 %v6056_v59, %s5816_s20  ;;  %1209 = vrot.lane.b32.xlu1 %v6044_v57, %s5816_s20 }
 0x425   : > { %1215 = vrot.lane.b32.xlu0 %v6068_v61, %s5816_s20  ;;  %1213 = vrot.lane.b32.xlu1 %v6051_v58, %s5816_s20 }
 0x429   : > { %1217 = vrot.lane.b32.xlu0 %v6063_v60, %s5816_s20  ;;  %1233 = vrot.lane.b32.xlu1 %v6111_v4, %s5816_s20 }
 0x42d   : > { %1219 = vrot.lane.b32.xlu0 %v6080_v63, %s5816_s20 }
 0x431   : > { %1221 = vrot.lane.b32.xlu0 %v6075_v62, %s5816_s20 }
 0x435   : > { %1223 = vrot.lane.b32.xlu0 %v6092_v1, %s5816_s20 }
 0x439   : > { %1225 = vrot.lane.b32.xlu0 %v6087_v0, %s5816_s20 }
 0x43d   : > { %1227 = vrot.lane.b32.xlu0 %v6104_v3, %s5816_s20 }
 0x441   : > { %1229 = vrot.lane.b32.xlu0 %v6099_v2, %s5816_s20 }
 0x445   : > { %1231 = vrot.lane.b32.xlu0 %v6116_v5, %s5816_s20 }
 0x46f   : > { %v5517_v54 = vpop.permute.xlu0 %5516 }
 0x470   : > { %v5519_v55 = vunpack.i.h.bf16 %v5517_v54  ;;  %v5518_v56 = vunpack.i.l.bf16 %v5517_v54 }
 0x472   : > { %v5333_v58 = vpack.c.bf16 %v5519_v55, %v5518_v56 }
 0x473   : > { %v5522_v59 = vpop.permute.xlu1 %5521 }
 0x474   : > { %v5524_v60 = vunpack.i.h.bf16 %v5522_v59  ;;  %v5523_v61 = vunpack.i.l.bf16 %v5522_v59  ;;  %5335 = vmatprep.subr.msk.bf16.mxu1 %vm6277_vm9, %v5333_v58 }
 0x475   : > { %5338 = vmatpush3.bf16.xpose.msk.msra.mxu1 %vm6277_vm9, %v5333_v58 }
 0x476   : > { %v5339_v62 = vpack.c.bf16 %v5524_v60, %v5523_v61 }
 0x477   : > { %v5527_v63 = vpop.permute.xlu0 %5526 }
 0x478   : > { %5341 = vmatprep.subr.msk.bf16.mxu1 %vm6277_vm9, %v5339_v62  ;;  %v5529_v0 = vunpack.i.h.bf16 %v5527_v63  ;;  %v5528_v1 = vunpack.i.l.bf16 %v5527_v63 }
 0x47a   : > { %v5345_v2 = vpack.c.bf16 %v5529_v0, %v5528_v1 }
 0x47b   : > { %v5532_v3 = vpop.permute.xlu1 %5531 }
 0x47c   : > { %v5534_v4 = vunpack.i.h.bf16 %v5532_v3  ;;  %v5533_v5 = vunpack.i.l.bf16 %v5532_v3 }
 0x47d   : > { %5344 = vmatpush3.bf16.xpose.msk.msra.mxu1 %vm6277_vm9, %v5339_v62 }
 0x47e   : > { %5347 = vmatprep.subr.msk.bf16.mxu1 %vm6277_vm9, %v5345_v2  ;;  %v5351_v42 = vpack.c.bf16 %v5534_v4, %v5533_v5 }
 0x47f   : > { %v5537_v40 = vpop.permute.xlu0 %5536 }
 0x480   : > { %v5539_v45 = vunpack.i.h.bf16 %v5537_v40  ;;  %v5538_v46 = vunpack.i.l.bf16 %v5537_v40 }
 0x482   : > { %v5357_v50 = vpack.c.bf16 %v5539_v45, %v5538_v46 }
 0x483   : > { %v5542_v43 = vpop.permute.xlu1 %5541 }
 0x484   : > { %v5544_v7 = vunpack.i.h.bf16 %v5542_v43  ;;  %v5543_v8 = vunpack.i.l.bf16 %v5542_v43 }
 0x485   : > { %5350 = vmatpush3.bf16.xpose.msk.msra.mxu1 %vm6277_vm9, %v5345_v2 }
 0x486   : > { %5353 = vmatprep.subr.msk.bf16.mxu1 %vm6277_vm9, %v5351_v42  ;;  %v5363_v15 = vpack.c.bf16 %v5544_v7, %v5543_v8  ;;  %v1268_v8 = vld [vmem:[%s7044_s6 + $0x8] sm:$0xff] }
 0x487   : > { %v5547_v49 = vpop.permute.xlu0 %5546 }
 0x488   : > { %v5549_v24 = vunpack.i.h.bf16 %v5547_v49  ;;  %v5548_v26 = vunpack.i.l.bf16 %v5547_v49 }
 0x48a   : > { %v5369_v33 = vpack.c.bf16 %v5549_v24, %v5548_v26  ;;  %v1271_v24 = vld [vmem:[%s7044_s6 + $0x20] sm:$0xff] }
 0x48b   : > { %v1204_v52 = vpop.permute.xlu0 %1203  ;;  %v5552_v53 = vpop.permute.xlu1 %5551 }
 0x48c   : > { %v1251_v12 = vmul.f32 %v1204_v52, %v6188_v37  ;;  %v5554_v55 = vunpack.i.h.bf16 %v5552_v53  ;;  %v5553_v56 = vunpack.i.l.bf16 %v5552_v53 }
 0x48d   : > { %5356 = vmatpush3.bf16.xpose.msk.msra.mxu1 %vm6277_vm9, %v5351_v42 }
 0x48e   : > { %5359 = vmatprep.subr.msk.bf16.mxu1 %vm6277_vm9, %v5357_v50  ;;  %v5375_v61 = vpack.c.bf16 %v5554_v55, %v5553_v56  ;;  %v1275_v55 = vld [vmem:[%s7044_s6 + $0x40] sm:$0xff] }
 0x48f   : > { %v1208_v10 = vpop.permute.xlu0 %1207  ;;  %v1206_v11 = vpop.permute.xlu1 %1205 }
 0x490   : > { %v1252_v14 = vmul.f32 %v6185_v35, %v1206_v11  ;;  %v1253_v21 = vmul.f32 %v1208_v10, %v6196_v44  ;;  %v1267_v10 = vld [vmem:[%s7044_s6] sm:$0xff] }
 0x492   : > { %v5555_v17 = vpack.i.bf16 %v1252_v14, %v1251_v12 }
 0x493   : > { %v1212_v19 = vpop.permute.xlu0 %1211  ;;  %v1210_v20 = vpop.permute.xlu1 %1209 }
 0x494   : > { %v1254_v23 = vmul.f32 %v6193_v41, %v1210_v20  ;;  %5556 = vrot.lane.b32.xlu0 %v5555_v17, %s5816_s20  ;;  %v1255_v30 = vmul.f32 %v1212_v19, %v6203_v51  ;;  %v1270_v17 = vld [vmem:[%s7044_s6 + $0x18] sm:$0xff] }
 0x495   : > { %5362 = vmatpush3.bf16.xpose.msk.msra.mxu1 %vm6277_vm9, %v5357_v50 }
 0x496   : > { %v5560_v27 = vpack.i.bf16 %v1254_v23, %v1253_v21  ;;  %5365 = vmatprep.subr.msk.bf16.mxu1 %vm6277_vm9, %v5363_v15  ;;  %v1269_v23 = vld [vmem:[%s7044_s6 + $0x10] sm:$0xff] }
 0x497   : > { %v1216_v37 = vpop.permute.xlu0 %1215  ;;  %v1214_v29 = vpop.permute.xlu1 %1213 }
 0x498   : > { %v1256_v31 = vmul.f32 %v6200_v47, %v1214_v29  ;;  %5561 = vrot.lane.b32.xlu0 %v5560_v27, %s5816_s20  ;;  %v1257_v39 = vmul.f32 %v1216_v37, %v6210_v9 }
 0x49a   : > { %v5565_v34 = vpack.i.bf16 %v1256_v31, %v1255_v30  ;;  %v1272_v30 = vld [vmem:[%s7044_s6 + $0x28] sm:$0xff]  ;;  %v1273_v31 = vld [vmem:[%s7044_s6 + $0x30] sm:$0xff] }
 0x49b   : > { %v1218_v38 = vpop.permute.xlu0 %1217  ;;  %v1234_v46 = vpop.permute.xlu1 %1233 }
 0x49c   : > { %v1258_v54 = vmul.f32 %v6207_v6, %v1218_v38  ;;  %5566 = vrot.lane.b32.xlu0 %v5565_v34, %s5816_s20  ;;  %v6354_v50 = vmul.f32 %v6235_v32, %v1234_v46 }
 0x49d   : > { %5368 = vmatpush3.bf16.xpose.msk.msra.mxu1 %vm6277_vm9, %v5363_v15 }
 0x49e   : > { %v5570_v58 = vpack.i.bf16 %v1258_v54, %v1257_v39  ;;  %5371 = vmatprep.subr.msk.bf16.mxu1 %vm6277_vm9, %v5369_v33  ;;  %v1274_v54 = vld [vmem:[%s7044_s6 + $0x38] sm:$0xff] }
 0x49f   : > { %v1220_v59 = vpop.permute.xlu0 %1219 }
 0x4a0   : > { %v6319_v60 = vmul.f32 %v1220_v59, %v6217_v16  ;;  %5571 = vrot.lane.b32.xlu1 %v5570_v58, %s5816_s20 }
 0x4a3   : > { %v1222_v62 = vpop.permute.xlu0 %1221 }
 0x4a4   : > { %v6323_v63 = vmul.f32 %v6214_v13, %v1222_v62  ;;  %v1278_v62 = vld [vmem:[%s7044_s6 + $0x58] sm:$0xff] }
 0x4a5   : > { %5374 = vmatpush3.bf16.xpose.msk.msra.mxu1 %vm6277_vm9, %v5369_v33 }
 0x4a6   : > { %v5575_v0 = vpack.i.bf16 %v6323_v63, %v6319_v60  ;;  %5377 = vmatprep.subr.msk.bf16.mxu1 %vm6277_vm9, %v5375_v61 }
 0x4a7   : > { %v1224_v1 = vpop.permute.xlu0 %1223 }
 0x4a8   : > { %v6332_v2 = vmul.f32 %v1224_v1, %v6224_v22  ;;  %v1276_v1 = vld [vmem:[%s7044_s6 + $0x48] sm:$0xff] }
 0x4ab   : > { %v1226_v3 = vpop.permute.xlu0 %1225 }
 0x4ac   : > { %v6335_v4 = vmul.f32 %v6221_v18, %v1226_v3 }
 0x4ad   : > { %5380 = vmatpush3.bf16.xpose.msk.msra.mxu1 %vm6277_vm9, %v5375_v61 }
 0x4ae   : > { %v5580_v5 = vpack.i.bf16 %v6335_v4, %v6332_v2 }
 0x4af   : > { %v1228_v40 = vpop.permute.xlu0 %1227 }
 0x4b0   : > { %v6342_v42 = vmul.f32 %v1228_v40, %v6231_v28 }
 0x4b3   : > { %v1230_v43 = vpop.permute.xlu0 %1229 }
 0x4b4   : > { %v6345_v45 = vmul.f32 %v6228_v25, %v1230_v43  ;;  %5200 = vmatmul.mubr.msk.f32.vlgmr.msra.gmra.mrb[16].mxu1 %vm852_vm7, %v6185_v35 }
 0x4b5   : > { %5202 = vmatprep.mubr.msk.f32.mxu1 %vm852_vm7, %v6196_v44 }
 0x4b6   : > { %v5585_v57 = vpack.i.bf16 %v6345_v45, %v6342_v42 }
 0x4b7   : > { %v1232_v49 = vpop.permute.xlu0 %1231 }
 0x4b8   : > { %v6357_v52 = vmul.f32 %v1232_v49, %v6238_v36  ;;  %5203 = vmatmul.mubr.msk.f32.gmra.mrb[18].mxu1 %vm852_vm7, %v6193_v41  ;;  %v1277_v49 = vld [vmem:[%s7044_s6 + $0x50] sm:$0xff] }
 0x4b9   : > { %5205 = vmatprep.mubr.msk.f32.mxu1 %vm852_vm7, %v6203_v51 }
 0x4ba   : > { %v5590_v35 = vpack.i.bf16 %v6354_v50, %v6357_v52 }
 0x4bc   : > { %5206 = vmatmul.mubr.msk.f32.gmra.mrb[20].mxu1 %vm852_vm7, %v6200_v47 }
 0x4bd   : > { %5208 = vmatprep.mubr.msk.f32.mxu1 %vm852_vm7, %v6210_v9 }
 0x4c0   : > { %5209 = vmatmul.mubr.msk.f32.gmra.mrb[22].mxu1 %vm852_vm7, %v6207_v6 }
 0x4c1   : > { %5211 = vmatprep.mubr.msk.f32.mxu1 %vm852_vm7, %v6217_v16 }
 0x4c4   : > { %5212 = vmatmul.mubr.msk.f32.gmra.mrb[24].mxu1 %vm852_vm7, %v6214_v13 }
 0x4c5   : > { %5214 = vmatprep.mubr.msk.f32.mxu1 %vm852_vm7, %v6224_v22 }
 0x4c8   : > { %5215 = vmatmul.mubr.msk.f32.gmra.mrb[26].mxu1 %vm852_vm7, %v6221_v18 }
 0x4c9   : > { %5217 = vmatprep.mubr.msk.f32.mxu1 %vm852_vm7, %v6231_v28 }
 0x4cc   : > { %5218 = vmatmul.mubr.msk.f32.gmra.mrb[28].mxu1 %vm852_vm7, %v6228_v25 }
 0x4cd   : > { %5220 = vmatprep.mubr.msk.f32.mxu1 %vm852_vm7, %v6238_v36 }
 0x4d0   : > { %5221 = vmatmul.mubr.msk.f32.gmra.mrb[30].mxu1 %vm852_vm7, %v6235_v32 }
 0x506   : > { %v5557_v41 = vpop.permute.xlu0 %5556 }
 0x507   : > { %v5559_v44 = vunpack.i.h.bf16 %v5557_v41  ;;  %v5558_v47 = vunpack.i.l.bf16 %v5557_v41  ;;  %v1279_v41 = vld [vmem:[%s7044_s6 + $0x60] sm:$0xff] }
 0x509   : > { %v5381_v51 = vpack.c.bf16 %v5559_v44, %v5558_v47 }
 0x50a   : > { %v5562_v6 = vpop.permute.xlu0 %5561 }
 0x50b   : > { %v5564_v9 = vunpack.i.h.bf16 %v5562_v6  ;;  %v5563_v13 = vunpack.i.l.bf16 %v5562_v6  ;;  %5382 = vmatprep.subr.bf16.mxu0 %v5381_v51 }
 0x50c   : > { %5384 = vmatpush3.bf16.msra.mxu0 %v5381_v51 }
 0x50d   : > { %v5385_v16 = vpack.c.bf16 %v5564_v9, %v5563_v13  ;;  %v1280_v9 = vld [vmem:[%s7044_s6 + $0x68] sm:$0xff]  ;;  %v1281_v13 = vld [vmem:[%s7044_s6 + $0x70] sm:$0xff] }
 0x50e   : > { %v5567_v18 = vpop.permute.xlu0 %5566 }
 0x50f   : > { %v5569_v22 = vunpack.i.h.bf16 %v5567_v18  ;;  %v5568_v28 = vunpack.i.l.bf16 %v5567_v18  ;;  %5386 = vmatprep.subr.bf16.mxu0 %v5385_v16 }
 0x510   : > { %5388 = vmatpush3.bf16.msra.mxu0 %v5385_v16 }
 0x511   : > { %v5389_v25 = vpack.c.bf16 %v5569_v22, %v5568_v28 }
 0x512   : > { %v5572_v36 = vpop.permute.xlu1 %5571 }
 0x513   : > { %v5574_v53 = vunpack.i.h.bf16 %v5572_v36  ;;  %v5573_v7 = vunpack.i.l.bf16 %v5572_v36  ;;  %5390 = vmatprep.subr.bf16.mxu0 %v5389_v25 }
 0x514   : > { %5392 = vmatpush3.bf16.msra.mxu0 %v5389_v25  ;;  %v1282_v25 = vld [vmem:[%s7044_s6 + $0x78] sm:$0xff] }
 0x515   : > { %v5393_v32 = vpack.c.bf16 %v5574_v53, %v5573_v7 }
 0x517   : > { %5394 = vmatprep.subr.bf16.mxu0 %v5393_v32 }
 0x518   : > { %5396 = vmatpush3.bf16.msra.mxu0 %v5393_v32 }
 0x587   : > { %v5201_v11 = vpop.f32.mrb[16].mxu1 }
 0x588   : > { %v6393_v12 = vadd.f32 %v5201_v11, %v1268_v8  ;;  %v1477_v14 = vpop.f32.mrb[17].mxu1 }
 0x589   : > { %v6395_v15 = vadd.f32 %v1477_v14, %v1267_v10 }
 0x58a   : > { %1558 = vmax.xlane.f32.xlu1 %v6393_v12 }
 0x58b   : > { %v5204_v19 = vpop.f32.mrb[18].mxu1  ;;  %1556 = vmax.xlane.f32.xlu0 %v6395_v15 }
 0x58c   : > { %v6402_v20 = vadd.f32 %v5204_v19, %v1270_v17  ;;  %v1487_v21 = vpop.f32.mrb[19].mxu1 }
 0x58d   : > { %v6411_v37 = vadd.f32 %v1487_v21, %v1269_v23 }
 0x58f   : > { %v5207_v26 = vpop.f32.mrb[20].mxu1  ;;  %1562 = vmax.xlane.f32.xlu0 %v6402_v20 }
 0x590   : > { %v1497_v27 = vpop.f32.mrb[21].mxu1  ;;  %v6423_v38 = vadd.f32 %v5207_v26, %v1272_v30 }
 0x591   : > { %v6413_v29 = vadd.f32 %v1497_v27, %v1271_v24 }
 0x593   : > { %v5210_v33 = vpop.f32.mrb[22].mxu1  ;;  %1564 = vmax.xlane.f32.xlu1 %v6413_v29  ;;  %1560 = vmax.xlane.f32.xlu0 %v6411_v37 }
 0x594   : > { %v1507_v34 = vpop.f32.mrb[23].mxu1  ;;  %v6435_v59 = vadd.f32 %v5210_v33, %v1274_v54 }
 0x595   : > { %v6425_v39 = vadd.f32 %v1507_v34, %v1273_v31 }
 0x597   : > { %v5213_v56 = vpop.f32.mrb[24].mxu1  ;;  %1568 = vmax.xlane.f32.xlu1 %v6425_v39  ;;  %1566 = vmax.xlane.f32.xlu0 %v6423_v38 }
 0x598   : > { %v1517_v58 = vpop.f32.mrb[25].mxu1  ;;  %v6449_v46 = vadd.f32 %v5213_v56, %v1276_v1 }
 0x599   : > { %v6437_v61 = vadd.f32 %v1517_v58, %v1275_v55 }
 0x59b   : > { %v5216_v3 = vpop.f32.mrb[26].mxu1  ;;  %1572 = vmax.xlane.f32.xlu1 %v6437_v61  ;;  %1570 = vmax.xlane.f32.xlu0 %v6435_v59 }
 0x59c   : > { %v6447_v40 = vadd.f32 %v5216_v3, %v1278_v62  ;;  %v1527_v43 = vpop.f32.mrb[27].mxu1 }
 0x59d   : > { %v6459_v51 = vadd.f32 %v1527_v43, %v1277_v49 }
 0x59f   : > { %v5219_v44 = vpop.f32.mrb[28].mxu1  ;;  %1578 = vmax.xlane.f32.xlu1 %v6447_v40  ;;  %1574 = vmax.xlane.f32.xlu0 %v6449_v46 }
 0x5a0   : > { %v1537_v47 = vpop.f32.mrb[29].mxu1  ;;  %v6471_v22 = vadd.f32 %v5219_v44, %v1280_v9 }
 0x5a1   : > { %v6461_v6 = vadd.f32 %v1537_v47, %v1279_v41 }
 0x5a3   : > { %v5222_v16 = vpop.f32.mrb[30].mxu1  ;;  %1576 = vmax.xlane.f32.xlu1 %v6459_v51  ;;  %1580 = vmax.xlane.f32.xlu0 %v6461_v6 }
 0x5a4   : > { %v1547_v18 = vpop.f32.mrb[31].mxu1  ;;  %v6480_v36 = vadd.f32 %v5222_v16, %v1282_v25 }
 0x5a5   : > { %v6473_v28 = vadd.f32 %v1547_v18, %v1281_v13 }
 0x5a7   : > { %1582 = vmax.xlane.f32.xlu1 %v6471_v22  ;;  %1584 = vmax.xlane.f32.xlu0 %v6473_v28 }
 0x5ab   : > { %1586 = vmax.xlane.f32.xlu1 %v6480_v36 }
 0x5bc   : > { %5581 = vrot.lane.b32.xlu1 %v5580_v5, %s5816_s20 }
 0x5bd   : > { %5576 = vrot.lane.b32.xlu0 %v5575_v0, %s5816_s20 }
 0x617   : > { %v1559_v53 = vpop.xlane.xlu1 %1558 }
 0x618   : > { %v1589_v7 = vsub.f32 %v6393_v12, %v1559_v53  ;;  %v1557_v32 = vpop.xlane.xlu0 %1556 }
 0x619   : > { %v1588_v8 = vsub.f32 %v6395_v15, %v1557_v32 }
 0x61a   : > { %v1606_v10 = vmul.f32 1.442695, %v1589_v7 }
 0x61b   : > { %v1604_v11 = vmul.f32 1.442695, %v1588_v8 }
 0x61c   : > { %5727 = vpow2.f32 %v1606_v10  ;;  %v1563_v14 = vpop.xlane.xlu0 %1562 }
 0x61d   : > { %5729 = vpow2.f32 %v1604_v11  ;;  %v1591_v50 = vsub.f32 %v6402_v20, %v1563_v14 }
 0x620   : > { %v1565_v17 = vpop.xlane.xlu1 %1564  ;;  %v1561_v19 = vpop.xlane.xlu0 %1560 }
 0x621   : > { %v1592_v52 = vsub.f32 %v6413_v29, %v1565_v17  ;;  %v1590_v62 = vsub.f32 %v6411_v37, %v1561_v19 }
 0x623   : > { %v1612_v1 = vmul.f32 1.442695, %v1592_v52  ;;  %v1608_v43 = vmul.f32 1.442695, %v1590_v62 }
 0x624   : > { %v1569_v2 = vpop.xlane.xlu1 %1568  ;;  %v1567_v4 = vpop.xlane.xlu0 %1566 }
 0x625   : > { %v1593_v49 = vsub.f32 %v6423_v38, %v1567_v4 }
 0x626   : > { %v6493_v5 = vpop.eup %5727 }
 0x627   : > { %v6495_v21 = vpop.eup %5729  ;;  %1638 = vadd.xlane.f32.xlu1 %v6493_v5  ;;  %v1614_v20 = vmul.f32 1.442695, %v1593_v49 }
 0x628   : > { %v1573_v60 = vpop.xlane.xlu1 %1572  ;;  %1636 = vadd.xlane.f32.xlu0 %v6495_v21  ;;  %v1571_v63 = vpop.xlane.xlu0 %1570 }
 0x629   : > { %v1595_v3 = vsub.f32 %v6435_v59, %v1571_v63  ;;  %v1596_v59 = vsub.f32 %v6437_v61, %v1573_v60 }
 0x62b   : > { %v1618_v42 = vmul.f32 1.442695, %v1595_v3 }
 0x62c   : > { %v1579_v0 = vpop.xlane.xlu1 %1578  ;;  %v1575_v12 = vpop.xlane.xlu0 %1574 }
 0x62d   : > { %v1597_v45 = vsub.f32 %v6449_v46, %v1575_v12  ;;  %v1599_v29 = vsub.f32 %v6447_v40, %v1579_v0 }
 0x62f   : > { %v1622_v41 = vmul.f32 1.442695, %v1597_v45  ;;  %v1626_v44 = vmul.f32 1.442695, %v1599_v29 }
 0x630   : > { %v1577_v15 = vpop.xlane.xlu1 %1576  ;;  %v6499_v23 = vpop.xlane.xlu0 %1580 }
 0x631   : > { %v1598_v46 = vsub.f32 %v6459_v51, %v1577_v15 }
 0x633   : > { %v1624_v18 = vmul.f32 1.442695, %v1598_v46 }
 0x634   : > { %v1583_v24 = vpop.xlane.xlu1 %1582  ;;  %v1585_v26 = vpop.xlane.xlu0 %1584 }
 0x635   : > { %v1601_v38 = vsub.f32 %v6471_v22, %v1583_v24  ;;  %v1602_v61 = vsub.f32 %v6473_v28, %v1585_v26  ;;  %v1600_v22 = vsub.f32 %v6461_v6, %v6499_v23 }
 0x637   : > { %v1630_v40 = vmul.f32 1.442695, %v1601_v38  ;;  %v1632_v51 = vmul.f32 1.442695, %v1602_v61  ;;  %v1628_v7 = vmul.f32 1.442695, %v1600_v22 }
 0x638   : > { %5591 = vrot.lane.b32.xlu1 %v5590_v35, %s5816_s20  ;;  %v6505_v27 = vpop.xlane.xlu1 %1586  ;;  %v5577_v30 = vpop.permute.xlu0 %5576  ;;  %v1610_v35 = vmul.f32 1.442695, %v1591_v50 }
 0x639   : > { %v5579_v31 = vunpack.i.h.bf16 %v5577_v30  ;;  %v5578_v33 = vunpack.i.l.bf16 %v5577_v30  ;;  %v1603_v25 = vsub.f32 %v6480_v36, %v6505_v27 }
 0x63a   : > { %5731 = vpow2.f32 %v1610_v35 }
 0x63b   : > { %v5397_v34 = vpack.c.bf16 %v5579_v31, %v5578_v33  ;;  %5733 = vpow2.f32 %v1612_v1  ;;  %v1634_v32 = vmul.f32 1.442695, %v1603_v25 }
 0x63c   : > { %v5582_v54 = vpop.permute.xlu1 %5581  ;;  %5735 = vpow2.f32 %v1608_v43 }
 0x63d   : > { %v5584_v55 = vunpack.i.h.bf16 %v5582_v54  ;;  %v5583_v56 = vunpack.i.l.bf16 %v5582_v54  ;;  %5398 = vmatprep.subr.bf16.mxu0 %v5397_v34  ;;  %5737 = vpow2.f32 %v1618_v42 }
 0x63e   : > { %5586 = vrot.lane.b32.xlu0 %v5585_v57, %s5816_s20  ;;  %5400 = vmatpush3.bf16.msra.mxu0 %v5397_v34  ;;  %v1594_v57 = vsub.f32 %v6425_v39, %v1569_v2  ;;  %5739 = vpow2.f32 %v1614_v20  ;;  %v1620_v39 = vmul.f32 1.442695, %v1596_v59 }
 0x63f   : > { %v5401_v58 = vpack.c.bf16 %v5584_v55, %v5583_v56  ;;  %5741 = vpow2.f32 %v1622_v41 }
 0x640   : > { %v1616_v37 = vmul.f32 1.442695, %v1594_v57 }
 0x641   : > { %5402 = vmatprep.subr.bf16.mxu0 %v5401_v58 }
 0x642   : > { %5404 = vmatpush3.bf16.msra.mxu0 %v5401_v58  ;;  %5743 = vpow2.f32 %v1616_v37 }
 0x643   : > { %5745 = vpow2.f32 %v1626_v44 }
 0x644   : > { %v6521_v47 = vpop.eup %5731  ;;  %5747 = vpow2.f32 %v1620_v39 }
 0x645   : > { %v6523_v9 = vpop.eup %5733  ;;  %5749 = vpow2.f32 %v1630_v40 }
 0x646   : > { %v6529_v13 = vpop.eup %5735  ;;  %5751 = vpow2.f32 %v1624_v18 }
 0x647   : > { %v6531_v16 = vpop.eup %5737  ;;  %5753 = vpow2.f32 %v1632_v51 }
 0x648   : > { %v6539_v53 = vpop.eup %5739  ;;  %5755 = vpow2.f32 %v1628_v7 }
 0x649   : > { %v6541_v28 = vpop.eup %5741  ;;  %5757 = vpow2.f32 %v1634_v32 }
 0x64c   : > { %v6545_v6 = vpop.eup %5743 }
 0x64d   : > { %v6547_v8 = vpop.eup %5745 }
 0x64e   : > { %v6551_v36 = vpop.eup %5747 }
 0x64f   : > { %v6553_v10 = vpop.eup %5749 }
 0x650   : > { %v6557_v11 = vpop.eup %5751 }
 0x651   : > { %v6559_v14 = vpop.eup %5753 }
 0x652   : > { %v6563_v17 = vpop.eup %5755 }
 0x653   : > { %v6565_v19 = vpop.eup %5757 }
 0x65c   : > { %1642 = vadd.xlane.f32.xlu1 %v6521_v47 }
 0x65d   : > { %1644 = vadd.xlane.f32.xlu0 %v6523_v9 }
 0x660   : > { %1640 = vadd.xlane.f32.xlu1 %v6529_v13 }
 0x661   : > { %1650 = vadd.xlane.f32.xlu0 %v6531_v16 }
 0x664   : > { %1646 = vadd.xlane.f32.xlu1 %v6539_v53 }
 0x665   : > { %1654 = vadd.xlane.f32.xlu0 %v6541_v28 }
 0x668   : > { %1648 = vadd.xlane.f32.xlu1 %v6545_v6 }
 0x669   : > { %1658 = vadd.xlane.f32.xlu0 %v6547_v8 }
 0x66c   : > { %1652 = vadd.xlane.f32.xlu1 %v6551_v36 }
 0x66d   : > { %1662 = vadd.xlane.f32.xlu0 %v6553_v10 }
 0x670   : > { %1656 = vadd.xlane.f32.xlu1 %v6557_v11 }
 0x671   : > { %1664 = vadd.xlane.f32.xlu0 %v6559_v14 }
 0x674   : > { %1660 = vadd.xlane.f32.xlu1 %v6563_v17 }
 0x675   : > { %1666 = vadd.xlane.f32.xlu0 %v6565_v19 }
 0x6b4   : > { %v1639_v2 = vpop.xlane.xlu1 %1638 }
 0x6b5   : > { %v1637_v4 = vpop.xlane.xlu0 %1636 }
 0x6b6   : > { %5759 = vrcp.f32 %v1637_v4 }
 0x6b7   : > { %5761 = vrcp.f32 %v1639_v2 }
 0x6b8   : > { %v5592_v60 = vpop.permute.xlu1 %5591 }
 0x6b9   : > { %v5587_v63 = vpop.permute.xlu0 %5586  ;;  %v5594_v0 = vunpack.i.h.bf16 %v5592_v60  ;;  %v5593_v12 = vunpack.i.l.bf16 %v5592_v60 }
 0x6ba   : > { %v5589_v15 = vunpack.i.h.bf16 %v5587_v63  ;;  %v5588_v23 = vunpack.i.l.bf16 %v5587_v63 }
 0x6bb   : > { %v5409_v26 = vpack.c.bf16 %v5594_v0, %v5593_v12 }
 0x6bc   : > { %v5405_v24 = vpack.c.bf16 %v5589_v15, %v5588_v23 }
 0x6be   : > { %5406 = vmatprep.subr.bf16.mxu0 %v5405_v24 }
 0x6bf   : > { %5408 = vmatpush3.bf16.msra.mxu0 %v5405_v24 }
 0x6c0   : > { %v5760_v27 = vpop.eup %5759  ;;  %5410 = vmatprep.subr.bf16.mxu0 %v5409_v26 }
 0x6c1   : > { %v5762_v30 = vpop.eup %5761  ;;  %v1684_v31 = vmul.f32 %v5760_v27, %v6495_v21 }
 0x6c2   : > { %v1685_v33 = vmul.f32 %v5762_v30, %v6493_v5 }
 0x6c3   : > { %5412 = vmatpush3.bf16.msra.mxu0 %v5409_v26  ;;  %5255 = vmatprep.mubr.f32.mxu0 %v1684_v31 }
 0x6c6   : > { %5256 = vmatmul.mubr.f32.vlgmr.msra.gmra.mrb[4].mxu0 %v1685_v33 }
 0x6e9   : > { %v1643_v34 = vpop.xlane.xlu1 %1642 }
 0x6ea   : > { %v1645_v54 = vpop.xlane.xlu0 %1644  ;;  %5763 = vrcp.f32 %v1643_v34 }
 0x6eb   : > { %5765 = vrcp.f32 %v1645_v54 }
 0x6ed   : > { %v1641_v55 = vpop.xlane.xlu1 %1640 }
 0x6ee   : > { %5767 = vrcp.f32 %v1641_v55  ;;  %v1651_v56 = vpop.xlane.xlu0 %1650 }
 0x6f1   : > { %v1647_v58 = vpop.xlane.xlu1 %1646 }
 0x6f2   : > { %5769 = vrcp.f32 %v1647_v58  ;;  %v1655_v50 = vpop.xlane.xlu0 %1654  ;;  %v1910_v58 = vld [vmem:[%s7042_s4 + $0x8] sm:$0xff] }
 0x6f3   : > { %5771 = vrcp.f32 %v1651_v56 }
 0x6f4   : > { %v5764_v35 = vpop.eup %5763 }
 0x6f5   : > { %v1649_v52 = vpop.xlane.xlu1 %1648  ;;  %v5766_v62 = vpop.eup %5765  ;;  %v1687_v49 = vmul.f32 %v5764_v35, %v6521_v47 }
 0x6f6   : > { %5773 = vrcp.f32 %v1649_v52  ;;  %v1659_v21 = vpop.xlane.xlu0 %1658  ;;  %v1688_v42 = vmul.f32 %v5766_v62, %v6523_v9  ;;  %v5598_v52 = vld [vmem:[%s5951_s28 + $0x8] sm:$0xff]  }
 0x6f7   : > { %5775 = vrcp.f32 %v1655_v50  ;;  %v5597_v50 = vld [vmem:[%s5951_s28] sm:$0xff]  }
 0x6f8   : > { %v5768_v1 = vpop.eup %5767 }
 0x6f9   : > { %v1653_v5 = vpop.xlane.xlu1 %1652  ;;  %v1686_v3 = vmul.f32 %v5768_v1, %v6529_v13  ;;  %v1991_v1 = vlaneseq }
 0x6fa   : > { %5777 = vrcp.f32 %v1653_v5  ;;  %v1663_v43 = vpop.xlane.xlu0 %1662 }
 0x6fb   : > { %5258 = vmatprep.mubr.f32.mxu0 %v1686_v3  ;;  %5779 = vrcp.f32 %v1659_v21  ;;  %v6598_v5 = vshrl.u32 %v1991_v1, 7 }
 0x6fc   : > { %v5770_v45 = vpop.eup %5769  ;;  %5259 = vmatmul.mubr.f32.gmra.mrb[6].mxu0 %v1687_v49 }
 0x6fd   : > { %v1657_v57 = vpop.xlane.xlu1 %1656  ;;  %5261 = vmatprep.mubr.f32.mxu0 %v1688_v42  ;;  %v1689_v20 = vmul.f32 %v5770_v45, %v6539_v53  ;;  %v5772_v41 = vpop.eup %5771  ;;  %v6601_v3 = vsub.s32 5, %v6598_v5 }
 0x6fe   : > { %5781 = vrcp.f32 %v1657_v57  ;;  %v1665_v29 = vpop.xlane.xlu0 %1664  ;;  %v1691_v47 = vmul.f32 %v5772_v41, %v6531_v16  ;;  %v5799_v41 = vld [vmem:[#allocation2] sm:$0xff] }
 0x6ff   : > { %5783 = vrcp.f32 %v1663_v43  ;;  %v6604_v43 = vld [vmem:[%s5958_s19] sm:$0x3f] }
 0x700   : > { %v5774_v37 = vpop.eup %5773  ;;  %5262 = vmatmul.mubr.f32.gmra.mrb[8].mxu0 %v1689_v20  ;;  %5785 = vrcp.f32 %v1665_v29  ;;  %v1994_v49 = vrot.slane %v6604_v43, %v6601_v3 }
 0x701   : > { %v1661_v59 = vpop.xlane.xlu1 %1660  ;;  %v1690_v44 = vmul.f32 %v5774_v37, %v6545_v6  ;;  %v5776_v9 = vpop.eup %5775 }
 0x702   : > { %5787 = vrcp.f32 %v1661_v59  ;;  %v1667_v38 = vpop.xlane.xlu0 %1666  ;;  %v1693_v40 = vmul.f32 %v5776_v9, %v6541_v28 }
 0x703   : > { %5264 = vmatprep.mubr.f32.mxu0 %v1690_v44  ;;  %5789 = vrcp.f32 %v1667_v38  ;;  %v5800_v44 = vld [vmem:[#allocation2 + $0x8] sm:$0xff] }
 0x704   : > { %v5778_v39 = vpop.eup %5777  ;;  %5265 = vmatmul.mubr.f32.gmra.mrb[10].mxu0 %v1691_v47 }
 0x705   : > { %v1692_v46 = vmul.f32 %v5778_v39, %v6551_v36  ;;  %v5780_v61 = vpop.eup %5779 }
 0x706   : > { %v1695_v51 = vmul.f32 %v5780_v61, %v6547_v8  ;;  %v1909_v8 = vld [vmem:[%s7042_s4] sm:$0xff] }
 0x707   : > { %5267 = vmatprep.mubr.f32.mxu0 %v1692_v46 }
 0x708   : > { %v5782_v13 = vpop.eup %5781  ;;  %5268 = vmatmul.mubr.f32.gmra.mrb[12].mxu0 %v1693_v40 }
 0x709   : > { %v1694_v18 = vmul.f32 %v5782_v13, %v6557_v11  ;;  %v5784_v22 = vpop.eup %5783 }
 0x70a   : > { %v5786_v25 = vpop.eup %5785  ;;  %v1697_v7 = vmul.f32 %v5784_v22, %v6553_v10 }
 0x70b   : > { %5270 = vmatprep.mubr.f32.mxu0 %v1694_v18  ;;  %v1698_v28 = vmul.f32 %v5786_v25, %v6559_v14 }
 0x70c   : > { %v5788_v16 = vpop.eup %5787  ;;  %5271 = vmatmul.mubr.f32.gmra.mrb[14].mxu0 %v1695_v51 }
 0x70d   : > { %v1696_v53 = vmul.f32 %v5788_v16, %v6563_v17  ;;  %v5790_v32 = vpop.eup %5789  ;;  %v2093_v16 = vld [vmem:[%s5963_s2] sm:$0xff] }
 0x70e   : > { %v1699_v6 = vmul.f32 %v5790_v32, %v6565_v19 }
 0x70f   : > { %5273 = vmatprep.mubr.f32.mxu0 %v1696_v53  ;;  %v2101_v53 = vld [vmem:[%s5963_s2 + $0x40] sm:$0xff] }
 0x710   : > { %5274 = vmatmul.mubr.f32.gmra.mrb[16].mxu0 %v1697_v7  ;;  %v2095_v7 = vld [vmem:[%s5963_s2 + $0x10] sm:$0xff]  ;;  %v4620_v32 = vcombine.high %v2093_v16, %v2101_v53 }
 0x711   : > { %5276 = vmatprep.mubr.f32.mxu0 %v1698_v28  ;;  %v2103_v28 = vld [vmem:[%s5963_s2 + $0x50] sm:$0xff] }
 0x714   : > { %5277 = vmatmul.mubr.f32.gmra.mrb[18].mxu0 %v1699_v6  ;;  %v4619_v6 = vcombine.low %v2093_v16, %v2101_v53 }
 0x715   : > { %5311 = vmatprep.mubr.f32.mxu0 %v1909_v8  ;;  %v4623_v8 = vcombine.low %v2095_v7, %v2103_v28 }
 0x799   : > { %v5257_v36 = vpop.f32.mrb[4].mxu0 }
 0x79a   : > { %v1830_v11 = vpop.f32.mrb[5].mxu0 }
 0x79b   : > { %v5413_v2 = vpack.c.bf16 %v5257_v36, %v1830_v11  ;;  %v4624_v36 = vcombine.high %v2095_v7, %v2103_v28  ;;  %v2109_v11 = vld [vmem:[%s5963_s2 + $0x80] sm:$0xff]  ;;  %v2098_v28 = vld [vmem:[%s5963_s2 + $0x28] sm:$0xff] }
 0x79d   : > { %5414 = vmatprep.subr.bf16.mxu0 %v5413_v2  ;;  %2458 = vmatprep.subr.bf16.mxu1 %v4624_v36 }
 0x79e   : > { %5416 = vmatpush3.bf16.msra.mxu0 %v5413_v2  ;;  %v2117_v2 = vld [vmem:[%s5963_s2 + $0xc0] sm:$0xff]  ;;  %2459 = vmatpush1.bf16.msra.mxu1 %v4623_v8 }
 0x7cf   : > { %v5260_v10 = vpop.f32.mrb[6].mxu0 }
 0x7d0   : > { %v1840_v17 = vpop.f32.mrb[7].mxu0 }
 0x7d1   : > { %v5417_v4 = vpack.c.bf16 %v5260_v10, %v1840_v17  ;;  %v2111_v10 = vld [vmem:[%s5963_s2 + $0x90] sm:$0xff]  ;;  %v4636_v17 = vcombine.high %v2109_v11, %v2117_v2 }
 0x7d3   : > { %v5263_v60 = vpop.f32.mrb[8].mxu0  ;;  %5418 = vmatprep.subr.bf16.mxu0 %v5417_v4 }
 0x7d4   : > { %v1850_v14 = vpop.f32.mrb[9].mxu0  ;;  %5420 = vmatpush3.bf16.msra.mxu0 %v5417_v4  ;;  %v2119_v4 = vld [vmem:[%s5963_s2 + $0xd0] sm:$0xff] }
 0x7d5   : > { %v5421_v63 = vpack.c.bf16 %v5263_v60, %v1850_v14  ;;  %v4635_v60 = vcombine.low %v2109_v11, %v2117_v2  ;;  %v4639_v14 = vcombine.low %v2111_v10, %v2119_v4  ;;  %v5599_v2 = vld [vmem:[%s5974_s10 + $0x40] sm:$0xff]  }
 0x7d7   : > { %v5266_v19 = vpop.f32.mrb[10].mxu0  ;;  %5422 = vmatprep.subr.bf16.mxu0 %v5421_v63 }
 0x7d8   : > { %v1860_v0 = vpop.f32.mrb[11].mxu0  ;;  %5424 = vmatpush3.bf16.msra.mxu0 %v5421_v63  ;;  %v4640_v63 = vcombine.high %v2111_v10, %v2119_v4  ;;  %v2114_v10 = vld [vmem:[%s5963_s2 + $0xa8] sm:$0xff] }
 0x7d9   : > { %v5425_v12 = vpack.c.bf16 %v5266_v19, %v1860_v0  ;;  %v2094_v19 = vld [vmem:[%s5963_s2 + $0x8] sm:$0xff] }
 0x7da   : > { %2460 = vmatprep.subr.bf16.mxu1 %v4640_v63  ;;  %v2102_v0 = vld [vmem:[%s5963_s2 + $0x48] sm:$0xff]  ;;  %v2100_v63 = vld [vmem:[%s5963_s2 + $0x38] sm:$0xff] }
 0x7db   : > { %v5269_v15 = vpop.f32.mrb[12].mxu0  ;;  %5426 = vmatprep.subr.bf16.mxu0 %v5425_v12  ;;  %2461 = vmatpush1.bf16.msra.mxu1 %v4639_v14  ;;  %v5600_v14 = vld [vmem:[%s5974_s10] sm:$0xff]  }
 0x7dc   : > { %v1870_v23 = vpop.f32.mrb[13].mxu0  ;;  %5428 = vmatpush3.bf16.msra.mxu0 %v5425_v12  ;;  %v2097_v12 = vld [vmem:[%s5963_s2 + $0x20] sm:$0xff] }
 0x7dd   : > { %v5429_v24 = vpack.c.bf16 %v5269_v15, %v1870_v23  ;;  %v5817_v15 = vmov 0   ;;  %v4622_v23 = vcombine.high %v2094_v19, %v2102_v0 }
 0x7de   : > { %2490 = vmatprep.mubr.bf16.mxu1 %v5817_v15 }
 0x7df   : > { %v5272_v26 = vpop.f32.mrb[14].mxu0  ;;  %5430 = vmatprep.subr.bf16.mxu0 %v5429_v24 }
 0x7e0   : > { %v1880_v27 = vpop.f32.mrb[15].mxu0  ;;  %5432 = vmatpush3.bf16.msra.mxu0 %v5429_v24  ;;  %v2105_v24 = vld [vmem:[%s5963_s2 + $0x60] sm:$0xff] }
 0x7e1   : > { %v5433_v30 = vpack.c.bf16 %v5272_v26, %v1880_v27  ;;  %v4621_v26 = vcombine.low %v2094_v19, %v2102_v0  ;;  %v4627_v27 = vcombine.low %v2097_v12, %v2105_v24  ;;  %v2108_v19 = vld [vmem:[%s5963_s2 + $0x78] sm:$0xff]  ;;  %v5601_v0 = vld [vmem:[%s5974_s10 + $0x48] sm:$0xff]  }
 0x7e3   : > { %v5275_v31 = vpop.f32.mrb[16].mxu0  ;;  %5434 = vmatprep.subr.bf16.mxu0 %v5433_v30 }
 0x7e4   : > { %v1890_v33 = vpop.f32.mrb[17].mxu0  ;;  %5436 = vmatpush3.bf16.msra.mxu0 %v5433_v30  ;;  %v4628_v30 = vcombine.high %v2097_v12, %v2105_v24  ;;  %v5602_v24 = vld [vmem:[%s5974_s10 + $0x8] sm:$0xff]  }
 0x7e5   : > { %v5437_v34 = vpack.c.bf16 %v5275_v31, %v1890_v33 }
 0x7e6   : > { %2544 = vmatprep.subr.bf16.mxu1 %v4628_v30  ;;  %v5603_v30 = vld [vmem:[%s5974_s10 + $0x50] sm:$0xff]  }
 0x7e7   : > { %v5278_v54 = vpop.f32.mrb[18].mxu0  ;;  %5438 = vmatprep.subr.bf16.mxu0 %v5437_v34 }
 0x7e8   : > { %v1900_v55 = vpop.f32.mrb[19].mxu0  ;;  %5440 = vmatpush3.bf16.msra.mxu0 %v5437_v34 }
 0x7e9   : > { %v5441_v56 = vpack.c.bf16 %v5278_v54, %v1900_v55 }
 0x7eb   : > { %5442 = vmatprep.subr.bf16.mxu0 %v5441_v56 }
 0x7ec   : > { %5444 = vmatpush3.bf16.msra.mxu0 %v5441_v56 }
 0x7ed   : > { %5314 = vmatprep.subr.bf16.mxu0 %v5812_v48 }
 0x7ef   : > { %5312 = vmatmul.mubr.f32.vlgmr.msra.gmra.mrb[20].mxu0 %v1910_v58  ;;  %v6627_v58 = vsub.s32 0, %v6598_v5 }
 0x7f0   : > { %5315 = vmatpush3.bf16.msra.mxu0 %v5597_v50  ;;  %5318 = vmatprep.mubr.msk.bf16.mxu0 %vm5813_vm6, %v5812_v48 }
 0x7f1   : > { %5316 = vmatprep.subr.bf16.mxu0 %v5812_v48 }
 0x7f4   : > { %5317 = vmatpush3.bf16.msra.mxu0 %v5598_v52  ;;  %v2083_v52 = vrot.slane %v6604_v43, %v6627_v58 }
 0x7f5   : > { %2372 = vmatprep.subr.bf16.mxu0 %v4620_v32 }
 0x8c2   : > { %v5313_v35 = vpop.f32.mrb[20].mxu0 }
 0x8c3   : > { %v1977_v21 = vpop.f32.mrb[21].mxu0 }
 0x8c4   : > { %v1986_v62 = vpack.c.bf16 %v5313_v35, %v1977_v21  ;;  %v6632_v35 = vsub.s32 1, %v6598_v5 }
 0x8c6   : > { %5319 = vmatmul.mubr.msk.bf16.vlgmr.msra.gmra.mrb[24].mxu0 %vm852_vm7, %v1986_v62  ;;  %v2089_v1 = vrot.slane %v6604_v43, %v6632_v35  ;;  %v2096_v43 = vld [vmem:[%s5963_s2 + $0x18] sm:$0xff] }
 0x8c7   : > { %2373 = vmatpush1.bf16.msra.mxu0 %v4619_v6  ;;  %2404 = vmatprep.mubr.bf16.mxu0 %v5817_v15  ;;  %v2106_v6 = vld [vmem:[%s5963_s2 + $0x68] sm:$0xff] }
 0x8c8   : > { %2374 = vmatprep.subr.bf16.mxu0 %v4636_v17  ;;  %v4630_v11 = vcombine.high %v2098_v28, %v2106_v6  ;;  %v2122_v17 = vld [vmem:[%s5963_s2 + $0xe8] sm:$0xff]  ;;  %v4629_v4 = vcombine.low %v2098_v28, %v2106_v6 }
 0x8c9   : > { %v4645_v12 = vcombine.low %v2114_v10, %v2122_v17 }
 0x8cb   : > { %2375 = vmatpush1.bf16.msra.mxu0 %v4635_v60  ;;  %v4646_v60 = vcombine.high %v2114_v10, %v2122_v17  ;;  %v6739_v10 = vsub.s32 3, %v6598_v5 }
 0x8cc   : > { %2415 = vmatprep.subr.bf16.mxu0 %v4622_v23  ;;  %v4634_v23 = vcombine.high %v2100_v63, %v2108_v19 }
 0x999   : > { %v2044_v42 = vpop.f32.mrb[24].mxu0 }
 0x99a   : > { %v2045_v48 = vadd.f32 %v2044_v42, %v1994_v49  ;;  %v5320_v45 = vpop.f32.mrb[25].mxu0 }
 0x99b   : > { %v2047_v57 = vpop.f32.mrb[26].mxu0  ;;  %v2110_v45 = vld [vmem:[%s5963_s2 + $0x88] sm:$0xff] }
 0x99c   : > { %v2048_v20 = vadd.f32 %v2047_v57, %v1994_v49  ;;  %v5321_v29 = vpop.f32.mrb[27].mxu0  ;;  %v2051_v37 = vadd.f32 %v5799_v41, %v2045_v48  ;;  %v2118_v57 = vld [vmem:[%s5963_s2 + $0xc8] sm:$0xff] }
 0x99d   : > { %v2121_v29 = vld [vmem:[%s5963_s2 + $0xe0] sm:$0xff] }
 0x99e   : > { %v2053_v59 = vsel %vm852_vm7, %v2051_v37, 0.0  ;;  %v2052_v38 = vadd.f32 %v5800_v44, %v2048_v20  ;;  %v2113_v20 = vld [vmem:[%s5963_s2 + $0xa0] sm:$0xff]  ;;  %v4638_v44 = vcombine.high %v2110_v45, %v2118_v57 }
 0x99f   : > { %2054 = vadd.xlane.f32.xlu0 %v2053_v59 }
 0x9a0   : > { %v2056_v47 = vsel %vm852_vm7, %v2052_v38, 0.0 }
 0x9a3   : > { %2057 = vadd.xlane.f32.xlu0 %v2056_v47  ;;  %v2104_v47 = vld [vmem:[%s5963_s2 + $0x58] sm:$0xff] }
 0x9a4   : > { %v4625_v16 = vcombine.low %v2096_v43, %v2104_v47 }
 0xa2c   : > { %v2055_v9 = vpop.xlane.xlu0 %2054 }
 0xa2d   : > { %v2060_v39 = vmul.f32 0.03125, %v2055_v9  ;;  %v2099_v9 = vld [vmem:[%s5963_s2 + $0x30] sm:$0xff] }
 0xa2f   : > { %v2062_v46 = vsub.f32 %v2051_v37, %v2060_v39  ;;  %v2107_v39 = vld [vmem:[%s5963_s2 + $0x70] sm:$0xff] }
 0xa30   : > { %v2058_v40 = vpop.xlane.xlu0 %2057  ;;  %v4631_v53 = vcombine.low %v2099_v9, %v2107_v39 }
 0xa31   : > { %v2061_v61 = vmul.f32 0.03125, %v2058_v40  ;;  %v2064_v13 = vmul.f32 %v2062_v46, %v2062_v46  ;;  %v4643_v40 = vcombine.low %v2113_v20, %v2121_v29 }
 0xa33   : > { %v2063_v18 = vsub.f32 %v2052_v38, %v2061_v61  ;;  %v2066_v22 = vsel %vm852_vm7, %v2064_v13, 0.0  ;;  %v4644_v38 = vcombine.high %v2113_v20, %v2121_v29  ;;  %v4626_v61 = vcombine.high %v2096_v43, %v2104_v47  ;;  %v5618_v20 = vld [vmem:[%s5974_s10 + $0x98] sm:$0xff]   ;;  %v5619_v29 = vld [vmem:[%s5974_s10 + $0x70] sm:$0xff]   ;;  %v5624_v47 = vld [vmem:[%s5974_s10 + $0xe8] sm:$0xff]  }
 0xa34   : > { %2067 = vadd.xlane.f32.xlu0 %v2066_v22  ;;  %v4632_v13 = vcombine.high %v2099_v9, %v2107_v39  ;;  %v2120_v22 = vld [vmem:[%s5963_s2 + $0xd8] sm:$0xff]  ;;  %v5626_v39 = vld [vmem:[%s5974_s10 + $0xa8] sm:$0xff]  }
 0xa35   : > { %v2065_v51 = vmul.f32 %v2063_v18, %v2063_v18  ;;  %v5623_v43 = vld [vmem:[%s5974_s10 + $0x78] sm:$0xff]  }
 0xa36   : > { %v5625_v9 = vld [vmem:[%s5974_s10 + $0x38] sm:$0xff]  }
 0xa37   : > { %v2069_v25 = vsel %vm852_vm7, %v2065_v51, 0.0  ;;  %v2115_v51 = vld [vmem:[%s5963_s2 + $0xb0] sm:$0xff] }
 0xa38   : > { %2070 = vadd.xlane.f32.xlu1 %v2069_v25  ;;  %v2123_v25 = vld [vmem:[%s5963_s2 + $0xf0] sm:$0xff] }
 0xa39   : > { %v4648_v32 = vcombine.high %v2115_v51, %v2123_v25  ;;  %v4647_v36 = vcombine.low %v2115_v51, %v2123_v25  ;;  %v2155_v51 = vsub.s32 6, %v6598_v5  ;;  %v6722_v25 = vld [vmem:[%s5968_s23 + $0x8] sm:$0xff] }
 0xac1   : > { %v2068_v31 = vpop.xlane.xlu0 %2067 }
 0xac2   : > { %v2072_v33 = vmul.f32 0.03125, %v2068_v31  ;;  %v4633_v31 = vcombine.low %v2100_v63, %v2108_v19 }
 0xac4   : > { %v2074_v34 = vadd.f32 1e-05, %v2072_v33 }
 0xac5   : > { %v2071_v54 = vpop.xlane.xlu1 %2070 }
 0xac6   : > { %5791 = vrsqrt.f32 %v2074_v34  ;;  %v2073_v55 = vmul.f32 0.03125, %v2071_v54  ;;  %v5605_v34 = vld [vmem:[%s5974_s10 + $0x10] sm:$0xff]   ;;  %v5607_v54 = vld [vmem:[%s5974_s10 + $0x58] sm:$0xff]  }
 0xac8   : > { %v2075_v56 = vadd.f32 1e-05, %v2073_v55 }
 0xaca   : > { %5793 = vrsqrt.f32 %v2075_v56  ;;  %v5604_v56 = vld [vmem:[%s5974_s10 + $0xc0] sm:$0xff]  }
 0xad0   : > { %v5792_v50 = vpop.eup %5791 }
 0xad1   : > { %v2078_v21 = vmul.f32 %v5792_v50, %v2062_v46  ;;  %v4637_v46 = vcombine.low %v2110_v45, %v2118_v57  ;;  %v5609_v50 = vld [vmem:[%s5974_s10 + $0x18] sm:$0xff]   ;;  %v5614_v45 = vld [vmem:[%s5974_s10 + $0x90] sm:$0xff]  }
 0xad2   : > { %v5616_v57 = vld [vmem:[%s5974_s10 + $0xd8] sm:$0xff]  }
 0xad3   : > { %v2084_v49 = vmul.f32 %v2083_v52, %v2078_v21  ;;  %v5606_v21 = vld [vmem:[%s5974_s10 + $0x80] sm:$0xff]  }
 0xad4   : > { %v5794_v62 = vpop.eup %5793 }
 0xad5   : > { %v2079_v42 = vmul.f32 %v5794_v62, %v2063_v18  ;;  %v6640_v41 = vadd.f32 %v2089_v1, %v2084_v49  ;;  %v2112_v18 = vld [vmem:[%s5963_s2 + $0x98] sm:$0xff]  ;;  %v5608_v62 = vld [vmem:[%s5974_s10 + $0xc8] sm:$0xff]  }
 0xad6   : > { %v4642_v7 = vcombine.high %v2112_v18, %v2120_v22  ;;  %v4641_v8 = vcombine.low %v2112_v18, %v2120_v22  ;;  %v5610_v49 = vld [vmem:[%s5974_s10 + $0x88] sm:$0xff]   ;;  %v5633_v18 = vld [vmem:[%s5974_s10 + $0xb8] sm:$0xff]   ;;  %v5636_v22 = vld [vmem:[%s5974_s10 + $0x1c0] sm:$0xff]  }
 0xad7   : > { %v2085_v48 = vmul.f32 %v2083_v52, %v2079_v42  ;;  %v5611_v52 = vld [vmem:[%s5974_s10 + $0x60] sm:$0xff]   ;;  %v5612_v42 = vld [vmem:[%s5974_s10 + $0xd0] sm:$0xff]  }
 0xad9   : > { %v6642_v37 = vadd.f32 %v2089_v1, %v2085_v48  ;;  %v5613_v1 = vld [vmem:[%s5974_s10 + $0x20] sm:$0xff]   ;;  %v5617_v48 = vld [vmem:[%s5974_s10 + $0x28] sm:$0xff]  }
 0xadb   : > { %v6646_v59 = vpack.c.bf16 %v6642_v37, %v6640_v41 }
 0xadd   : > { %4651 = vmatmul.mubr.msk.bf16.vlgmr.msra.gmra.mrb[28].mxu0 %vm852_vm7, %v6646_v59  ;;  %4653 = vmatmul.mubr.msk.bf16.vlgmr.msra.gmra.mrb[32].mxu1 %vm852_vm7, %v6646_v59 }
 0xade   : > { %2416 = vmatpush1.bf16.msra.mxu0 %v4621_v26  ;;  %2545 = vmatpush1.bf16.msra.mxu1 %v4627_v27  ;;  %v2116_v26 = vld [vmem:[%s5963_s2 + $0xb8] sm:$0xff] }
 0xadf   : > { %2417 = vmatprep.subr.bf16.mxu0 %v4638_v44  ;;  %2546 = vmatprep.subr.bf16.mxu1 %v4644_v38  ;;  %v2124_v27 = vld [vmem:[%s5963_s2 + $0xf8] sm:$0xff]  ;;  %v5621_v44 = vld [vmem:[%s5974_s10 + $0x30] sm:$0xff]   ;;  %v5622_v38 = vld [vmem:[%s5974_s10 + $0xa0] sm:$0xff]  }
 0xae0   : > { %2447 = vmatprep.mubr.bf16.mxu0 %v5817_v15  ;;  %2576 = vmatprep.mubr.bf16.mxu1 %v5817_v15  ;;  %v4650_v33 = vcombine.high %v2116_v26, %v2124_v27  ;;  %v4649_v55 = vcombine.low %v2116_v26, %v2124_v27 }
 0xae2   : > { %2418 = vmatpush1.bf16.msra.mxu0 %v4637_v46  ;;  %2547 = vmatpush1.bf16.msra.mxu1 %v4643_v40  ;;  %v5627_v46 = vld [vmem:[%s5974_s10 + $0xf0] sm:$0xff]   ;;  %v5628_v40 = vld [vmem:[%s5974_s10 + $0x140] sm:$0xff]  }
 0xae3   : > { %2501 = vmatprep.subr.bf16.mxu0 %v4626_v61  ;;  %2630 = vmatprep.subr.bf16.mxu1 %v4632_v13  ;;  %v5629_v61 = vld [vmem:[%s5974_s10 + $0xb0] sm:$0xff]   ;;  %v5631_v13 = vld [vmem:[%s5974_s10 + $0xf8] sm:$0xff]  }
 0xae5   : > { %4652 = vmatmul.mubr.msk.bf16.vlgmr.msra.gmra.mrb[32].mxu0 %vm852_vm7, %v6646_v59  ;;  %4655 = vmatmul.mubr.msk.bf16.vlgmr.msra.gmra.mrb[36].mxu1 %vm852_vm7, %v6646_v59 }
 0xae6   : > { %2502 = vmatpush1.bf16.msra.mxu0 %v4625_v16  ;;  %2631 = vmatpush1.bf16.msra.mxu1 %v4631_v53  ;;  %v6725_v16 = vrot.slane %v6722_v25, %v2155_v51  ;;  %v6728_v53 = vsub.s32 4, %v6598_v5 }
 0xae7   : > { %2503 = vmatprep.subr.bf16.mxu0 %v4642_v7  ;;  %2632 = vmatprep.subr.bf16.mxu1 %v4648_v32  ;;  %v2125_v7 = vld [vmem:[%s5968_s23] sm:$0xff]  ;;  %s7082_s23 = sld [smem:[#allocation12_spill]] (!%p4787_p5) }
 0xae8   : > { %2533 = vmatprep.mubr.bf16.mxu0 %v5817_v15  ;;  %2662 = vmatprep.mubr.bf16.mxu1 %v5817_v15  ;;  %v2132_v32 = vrot.slane %v2125_v7, %v6627_v58  ;;  %v2148_v28 = vrot.slane %v2125_v7, %v6728_v53  ;;  %v2136_v6 = vrot.slane %v2125_v7, %v6632_v35 }
 0xaea   : > { %2504 = vmatpush1.bf16.msra.mxu0 %v4641_v8  ;;  %2633 = vmatpush1.bf16.msra.mxu1 %v4647_v36  ;;  %v2152_v8 = vrot.slane %v2125_v7, %v6601_v3  ;;  %v6736_v36 = vsub.s32 2, %v6598_v5 }
 0xaeb   : > { %2587 = vmatprep.subr.bf16.mxu0 %v4630_v11  ;;  %4907 = vmatprep.subr.bf16.mxu1 %v5599_v2 }
 0xaed   : > { %4654 = vmatmul.mubr.msk.bf16.vlgmr.msra.gmra.mrb[36].mxu0 %vm852_vm7, %v6646_v59  ;;  %4657 = vmatmul.mubr.msk.bf16.vlgmr.msra.gmra.mrb[40].mxu1 %vm852_vm7, %v6646_v59 }
 0xaee   : > { %2588 = vmatpush1.bf16.msra.mxu0 %v4629_v4  ;;  %2619 = vmatprep.mubr.bf16.mxu0 %v5817_v15 }
 0xaef   : > { %2589 = vmatprep.subr.bf16.mxu0 %v4646_v60  ;;  %4908 = vmatpush3.bf16.msra.mxu1 %v5600_v14 }
 0xaf0   : > { %4909 = vmatprep.subr.bf16.mxu1 %v5601_v0 }
 0xaf2   : > { %2590 = vmatpush1.bf16.msra.mxu0 %v4645_v12 }
 0xaf3   : > { %2673 = vmatprep.subr.bf16.mxu0 %v4634_v23  ;;  %4910 = vmatpush3.bf16.msra.mxu1 %v5602_v24 }
 0xaf4   : > { %4911 = vmatprep.subr.bf16.mxu1 %v5603_v30  ;;  %v2140_v30 = vrot.slane %v2125_v7, %v6736_v36 }
 0xaf5   : > { %4656 = vmatmul.mubr.msk.bf16.vlgmr.msra.gmra.mrb[40].mxu0 %vm852_vm7, %v6646_v59 }
 0xaf6   : > { %2674 = vmatpush1.bf16.msra.mxu0 %v4633_v31  ;;  %2705 = vmatprep.mubr.bf16.mxu0 %v5817_v15  ;;  %v5615_v15 = vld [vmem:[%s5974_s10 + $0x68] sm:$0xff]   ;;  %v2164_v31 = vrot.slane %v6722_v25, %v6627_v58 }
 0xaf7   : > { %2675 = vmatprep.subr.bf16.mxu0 %v4650_v33  ;;  %4912 = vmatpush3.bf16.msra.mxu1 %v5605_v34 }
 0xaf8   : > { %4913 = vmatprep.subr.bf16.mxu1 %v5607_v54  ;;  %v2144_v54 = vrot.slane %v2125_v7, %v6739_v10 }
 0xafa   : > { %2676 = vmatpush1.bf16.msra.mxu0 %v4649_v55  ;;  %v2168_v55 = vrot.slane %v6722_v25, %v6632_v35 }
 0xafb   : > { %4929 = vmatprep.subr.bf16.mxu0 %v5604_v56  ;;  %4914 = vmatpush3.bf16.msra.mxu1 %v5609_v50 }
 0xafc   : > { %4915 = vmatprep.subr.bf16.mxu1 %v5611_v52 }
 0xafd   : > { %4658 = vmatmul.mubr.msk.bf16.vlgmr.msra.gmra.mrb[44].mxu0 %vm852_vm7, %v6646_v59  ;;  %v5620_v59 = vld [vmem:[%s5974_s10 + $0xe0] sm:$0xff]  }
 0xafe   : > { %4930 = vmatpush3.bf16.msra.mxu0 %v5606_v21 }
 0xaff   : > { %4931 = vmatprep.subr.bf16.mxu0 %v5608_v62  ;;  %4916 = vmatpush3.bf16.msra.mxu1 %v5613_v1 }
 0xb00   : > { %4917 = vmatprep.subr.bf16.mxu1 %v5615_v15 }
 0xb02   : > { %4932 = vmatpush3.bf16.msra.mxu0 %v5610_v49 }
 0xb03   : > { %4933 = vmatprep.subr.bf16.mxu0 %v5612_v42  ;;  %4918 = vmatpush3.bf16.msra.mxu1 %v5617_v48 }
 0xb04   : > { %4919 = vmatprep.subr.bf16.mxu1 %v5619_v29 }
 0xb06   : > { %4934 = vmatpush3.bf16.msra.mxu0 %v5614_v45  ;;  %v2159_v45 = vsub.s32 7, %v6598_v5  ;;  %v5656_v5 = vld [vmem:[%s5974_s10 + $0x1e8] sm:$0xff]  }
 0xb07   : > { %4935 = vmatprep.subr.bf16.mxu0 %v5616_v57  ;;  %4920 = vmatpush3.bf16.msra.mxu1 %v5621_v44  ;;  %v5630_v44 = vld [vmem:[%s5974_s10 + $0x100] sm:$0xff]  }
 0xb08   : > { %4921 = vmatprep.subr.bf16.mxu1 %v5623_v43 }
 0xb0a   : > { %4936 = vmatpush3.bf16.msra.mxu0 %v5618_v20 }
 0xb0b   : > { %4937 = vmatprep.subr.bf16.mxu0 %v5620_v59  ;;  %4922 = vmatpush3.bf16.msra.mxu1 %v5625_v9 }
 0xb0c   : > { %4951 = vmatprep.subr.bf16.mxu1 %v5628_v40 }
 0xb0e   : > { %4938 = vmatpush3.bf16.msra.mxu0 %v5622_v38 }
 0xb0f   : > { %4939 = vmatprep.subr.bf16.mxu0 %v5624_v47 }
 0xb12   : > { %4940 = vmatpush3.bf16.msra.mxu0 %v5626_v39  ;;  %v5632_v39 = vld [vmem:[%s5974_s10 + $0x148] sm:$0xff]  }
 0xb13   : > { %4941 = vmatprep.subr.bf16.mxu0 %v5627_v46 }
 0xb16   : > { %4942 = vmatpush3.bf16.msra.mxu0 %v5629_v61 }
 0xb17   : > { %4943 = vmatprep.subr.bf16.mxu0 %v5631_v13 }
 0xb1a   : > { %4944 = vmatpush3.bf16.msra.mxu0 %v5633_v18  ;;  %v2156_v18 = vrot.slane %v2125_v7, %v2155_v51  ;;  %v2184_v51 = vrot.slane %v6722_v25, %v6601_v3 }
 0xb1b   : > { %4973 = vmatprep.subr.bf16.mxu0 %v5636_v22 }
 0xbb0   : > { %v2406_v11 = vpop.f32.mrb[28].mxu0  ;;  %v2492_v2 = vpop.f32.mrb[32].mxu1 }
 0xbb1   : > { %v2407_v17 = vadd.f32 %v2406_v11, %v2132_v32  ;;  %v2493_v4 = vadd.f32 %v2492_v2, %v2148_v28  ;;  %v2408_v60 = vpop.f32.mrb[29].mxu0  ;;  %v2494_v14 = vpop.f32.mrb[33].mxu1  ;;  %v2160_v11 = vrot.slane %v2125_v7, %v2159_v45 }
 0xbb2   : > { %v2409_v63 = vadd.f32 %v2408_v60, %v2136_v6  ;;  %v2495_v19 = vadd.f32 %v2494_v14, %v2152_v8  ;;  %v2410_v0 = vpop.f32.mrb[30].mxu0  ;;  %v2496_v12 = vpop.f32.mrb[34].mxu1 }
 0xbb3   : > { %v2411_v23 = vadd.f32 %v2410_v0, %v2132_v32  ;;  %v2497_v24 = vadd.f32 %v2496_v12, %v2148_v28  ;;  %v2412_v26 = vpop.f32.mrb[31].mxu0  ;;  %v2498_v27 = vpop.f32.mrb[35].mxu1  ;;  %v2716_v56 = vmax.f32 %v2407_v17, 0.0  ;;  %v2720_v50 = vmax.f32 %v2493_v4, 0.0  ;;  %v5634_v4 = vld [vmem:[%s5974_s10 + $0x108] sm:$0xff]   ;;  %v5635_v0 = vld [vmem:[%s5974_s10 + $0x150] sm:$0xff]  }
 0xbb4   : > { %v2413_v33 = vadd.f32 %v2412_v26, %v2136_v6  ;;  %v2499_v34 = vadd.f32 %v2498_v27, %v2152_v8  ;;  %v2717_v62 = vmax.f32 %v2409_v63, 0.0  ;;  %v2721_v1 = vmax.f32 %v2495_v19, 0.0 }
 0xbb5   : > { %v2732_v52 = vmax.f32 %v2411_v23, 0.0  ;;  %v2736_v21 = vmax.f32 %v2497_v24, 0.0  ;;  %v2180_v8 = vrot.slane %v6722_v25, %v6728_v53 }
 0xbb6   : > { %v2733_v15 = vmax.f32 %v2413_v33, 0.0  ;;  %v2737_v49 = vmax.f32 %v2499_v34, 0.0  ;;  %v5637_v34 = vld [vmem:[%s5974_s10 + $0x110] sm:$0xff]  }
 0xbb7   : > { %v2748_v42 = vpack.c.bf16 %v2732_v52, %v2716_v56  ;;  %v6747_v48 = vpack.c.bf16 %v2736_v21, %v2720_v50  ;;  %v5639_v21 = vld [vmem:[%s5974_s10 + $0x158] sm:$0xff]  }
 0xbb8   : > { %v2749_v57 = vpack.c.bf16 %v2733_v15, %v2717_v62  ;;  %v2753_v20 = vpack.c.bf16 %v2737_v49, %v2721_v1  ;;  %v2449_v29 = vpop.f32.mrb[32].mxu0  ;;  %v2578_v59 = vpop.f32.mrb[36].mxu1  ;;  %v5640_v62 = vld [vmem:[%s5974_s10 + $0x1c8] sm:$0xff]  }
 0xbb9   : > { %v2450_v38 = vadd.f32 %v2449_v29, %v2140_v30  ;;  %v2579_v43 = vadd.f32 %v2578_v59, %v2164_v31  ;;  %v2451_v47 = vpop.f32.mrb[33].mxu0  ;;  %v2580_v9 = vpop.f32.mrb[37].mxu1 }
 0xbba   : > { %v2452_v46 = vadd.f32 %v2451_v47, %v2144_v54  ;;  %v2581_v40 = vadd.f32 %v2580_v9, %v2168_v55  ;;  %v2453_v61 = vpop.f32.mrb[34].mxu0  ;;  %v2582_v13 = vpop.f32.mrb[38].mxu1  ;;  %3824 = vmatprep.mubr.bf16.mxu1 %v2749_v57  ;;  %v5641_v47 = vld [vmem:[%s5974_s10 + $0x118] sm:$0xff]   ;;  %v5642_v9 = vld [vmem:[%s5974_s10 + $0x188] sm:$0xff]  }
 0xbbb   : > { %v2454_v22 = vadd.f32 %v2453_v61, %v2140_v30  ;;  %v2583_v32 = vadd.f32 %v2582_v13, %v2164_v31  ;;  %v2455_v28 = vpop.f32.mrb[35].mxu0  ;;  %v2584_v6 = vpop.f32.mrb[39].mxu1  ;;  %3825 = vmatmul.mubr.bf16.vlgmr.msra.gmra.mrb[44].mxu1 %v2748_v42  ;;  %v2718_v60 = vmax.f32 %v2450_v38, 0.0  ;;  %v2724_v14 = vmax.f32 %v2579_v43, 0.0 }
 0xbbc   : > { %v2456_v2 = vadd.f32 %v2455_v28, %v2144_v54  ;;  %v2585_v17 = vadd.f32 %v2584_v6, %v2168_v55  ;;  %4952 = vmatpush3.bf16.msra.mxu1 %v5630_v44  ;;  %3906 = vmatprep.mubr.bf16.mxu1 %v2753_v20  ;;  %v2719_v12 = vmax.f32 %v2452_v46, 0.0  ;;  %v2725_v23 = vmax.f32 %v2581_v40, 0.0  ;;  %v5638_v54 = vld [vmem:[%s5974_s10 + $0x180] sm:$0xff]  }
 0xbbd   : > { %v2734_v63 = vmax.f32 %v2454_v22, 0.0  ;;  %v2740_v19 = vmax.f32 %v2583_v32, 0.0  ;;  %4953 = vmatprep.subr.bf16.mxu1 %v5632_v39  ;;  %v2172_v44 = vrot.slane %v6722_v25, %v6736_v36  ;;  %v2176_v39 = vrot.slane %v6722_v25, %v6739_v10  ;;  %v5644_v22 = vld [vmem:[%s5974_s10 + $0x1d0] sm:$0xff]  }
 0xbbe   : > { %v2735_v24 = vmax.f32 %v2456_v2, 0.0  ;;  %v2741_v7 = vmax.f32 %v2585_v17, 0.0 }
 0xbbf   : > { %v2750_v26 = vpack.c.bf16 %v2734_v63, %v2718_v60  ;;  %v6760_v27 = vpack.c.bf16 %v2740_v19, %v2724_v14  ;;  %v5645_v60 = vld [vmem:[%s5974_s10 + $0x120] sm:$0xff]   ;;  %v5646_v14 = vld [vmem:[%s5974_s10 + $0x190] sm:$0xff]  }
 0xbc0   : > { %v2751_v30 = vpack.c.bf16 %v2735_v24, %v2719_v12  ;;  %v6762_v31 = vpack.c.bf16 %v2741_v7, %v2725_v23  ;;  %4954 = vmatpush3.bf16.msra.mxu1 %v5634_v4  ;;  %v2535_v3 = vpop.f32.mrb[36].mxu0  ;;  %v2664_v33 = vpop.f32.mrb[40].mxu1  ;;  %v5648_v12 = vld [vmem:[%s5974_s10 + $0x1d8] sm:$0xff]  }
 0xbc1   : > { %v2536_v55 = vadd.f32 %v2535_v3, %v2156_v18  ;;  %v2665_v56 = vadd.f32 %v2664_v33, %v2180_v8  ;;  %v2537_v50 = vpop.f32.mrb[37].mxu0  ;;  %v2666_v52 = vpop.f32.mrb[41].mxu1  ;;  %4955 = vmatprep.subr.bf16.mxu1 %v5635_v0  ;;  %v5647_v0 = vld [vmem:[%s5974_s10 + $0x168] sm:$0xff]   ;;  %v5650_v33 = vld [vmem:[%s5974_s10 + $0x198] sm:$0xff]  }
 0xbc2   : > { %v2538_v1 = vadd.f32 %v2537_v50, %v2160_v11  ;;  %v2667_v15 = vadd.f32 %v2666_v52, %v2184_v51  ;;  %v2539_v49 = vpop.f32.mrb[38].mxu0  ;;  %v2668_v42 = vpop.f32.mrb[42].mxu1  ;;  %3865 = vmatprep.mubr.bf16.mxu0 %v2751_v30  ;;  %v5649_v3 = vld [vmem:[%s5974_s10 + $0x128] sm:$0xff]  }
 0xbc3   : > { %v2540_v57 = vadd.f32 %v2539_v49, %v2156_v18  ;;  %v2669_v20 = vadd.f32 %v2668_v42, %v2180_v8  ;;  %v2541_v29 = vpop.f32.mrb[39].mxu0  ;;  %v2670_v59 = vpop.f32.mrb[43].mxu1  ;;  %3866 = vmatmul.mubr.bf16.vlgmr.msra.gmra.mrb[48].mxu0 %v2750_v26  ;;  %v2722_v46 = vmax.f32 %v2536_v55, 0.0  ;;  %v2728_v40 = vmax.f32 %v2665_v56, 0.0  ;;  %v5643_v18 = vld [vmem:[%s5974_s10 + $0x160] sm:$0xff]   ;;  %v5651_v55 = vld [vmem:[%s5974_s10 + $0x170] sm:$0xff]  }
 0xbc4   : > { %v2542_v38 = vadd.f32 %v2541_v29, %v2160_v11  ;;  %v2671_v43 = vadd.f32 %v2670_v59, %v2184_v51  ;;  %4956 = vmatpush3.bf16.msra.mxu1 %v5637_v34  ;;  %4974 = vmatpush3.bf16.msra.mxu0 %v5638_v54  ;;  %v2723_v32 = vmax.f32 %v2538_v1, 0.0  ;;  %v2729_v28 = vmax.f32 %v2667_v15, 0.0  ;;  %v5652_v56 = vld [vmem:[%s5974_s10 + $0x1e0] sm:$0xff]   ;;  %v5653_v49 = vld [vmem:[%s5974_s10 + $0x130] sm:$0xff]   ;;  %v5655_v29 = vld [vmem:[%s5974_s10 + $0x178] sm:$0xff]  }
 0xbc5   : > { %v2738_v61 = vmax.f32 %v2540_v57, 0.0  ;;  %v2744_v13 = vmax.f32 %v2669_v20, 0.0  ;;  %4957 = vmatprep.subr.bf16.mxu1 %v5639_v21  ;;  %4975 = vmatprep.subr.bf16.mxu0 %v5640_v62  ;;  %v2192_v21 = vrot.slane %v6722_v25, %v2159_v45  ;;  %v5654_v42 = vld [vmem:[%s5974_s10 + $0x1a0] sm:$0xff]  }
 0xbc6   : > { %v2739_v6 = vmax.f32 %v2542_v38, 0.0  ;;  %v2745_v8 = vmax.f32 %v2671_v43, 0.0  ;;  %v5657_v43 = vld [vmem:[%s5974_s10 + $0x138] sm:$0xff]  }
 0xbc7   : > { %v6776_v11 = vpack.c.bf16 %v2738_v61, %v2722_v46  ;;  %v6778_v2 = vpack.c.bf16 %v2744_v13, %v2728_v40  ;;  %v5659_v46 = vld [vmem:[%s5974_s10 + $0x1f0] sm:$0xff]   ;;  %v5660_v40 = vld [vmem:[%s5974_s10 + $0x240] sm:$0xff]  }
 0xbc8   : > { %v2755_v17 = vpack.c.bf16 %v2739_v6, %v2723_v32  ;;  %v6780_v4 = vpack.c.bf16 %v2745_v8, %v2729_v28  ;;  %4958 = vmatpush3.bf16.msra.mxu1 %v5641_v47  ;;  %4976 = vmatpush3.bf16.msra.mxu0 %v5642_v9  ;;  %v2621_v51 = vpop.f32.mrb[40].mxu0  ;;  %v5658_v47 = vld [vmem:[%s5974_s10 + $0x1a8] sm:$0xff]   ;;  %v5662_v32 = vld [vmem:[%s5974_s10 + $0x200] sm:$0xff]   ;;  %v5663_v28 = vld [vmem:[%s5974_s10 + $0x1f8] sm:$0xff]  }
 0xbc9   : > { %v2622_v63 = vadd.f32 %v2621_v51, %v2172_v44  ;;  %v2623_v19 = vpop.f32.mrb[41].mxu0  ;;  %4959 = vmatprep.subr.bf16.mxu1 %v5643_v18  ;;  %4977 = vmatprep.subr.bf16.mxu0 %v5644_v22  ;;  %v5661_v22 = vld [vmem:[%s5974_s10 + $0x1b0] sm:$0xff]   ;;  %v5664_v6 = vld [vmem:[%s5974_s10 + $0x248] sm:$0xff]   ;;  %v5665_v8 = vld [vmem:[%s5974_s10 + $0x1b8] sm:$0xff]  }
 0xbca   : > { %v2624_v23 = vadd.f32 %v2623_v19, %v2176_v39  ;;  %v2625_v24 = vpop.f32.mrb[42].mxu0  ;;  %3947 = vmatprep.mubr.bf16.mxu0 %v2755_v17  ;;  %v5666_v17 = vld [vmem:[%s5974_s10 + $0x208] sm:$0xff]   ;;  %v5667_v51 = vld [vmem:[%s5974_s10 + $0x250] sm:$0xff]  }
 0xbcb   : > { %v2626_v7 = vadd.f32 %v2625_v24, %v2172_v44  ;;  %v2627_v26 = vpop.f32.mrb[43].mxu0  ;;  %v2726_v34 = vmax.f32 %v2622_v63, 0.0  ;;  %v5671_v63 = vld [vmem:[%s5974_s10 + $0x258] sm:$0xff]   ;;  %v5672_v19 = vld [vmem:[%s5974_s10 + $0x2c8] sm:$0xff]   ;;  %v5677_v24 = vld [vmem:[%s5974_s10 + $0x220] sm:$0xff]  }
 0xbcc   : > { %v2628_v30 = vadd.f32 %v2627_v26, %v2176_v39  ;;  %4960 = vmatpush3.bf16.msra.mxu1 %v5645_v60  ;;  %4978 = vmatpush3.bf16.msra.mxu0 %v5646_v14  ;;  %v2727_v50 = vmax.f32 %v2624_v23, 0.0  ;;  %v5668_v60 = vld [vmem:[%s5974_s10 + $0x2c0] sm:$0xff]   ;;  %v5669_v14 = vld [vmem:[%s5974_s10 + $0x210] sm:$0xff]   ;;  %v5680_v26 = vld [vmem:[%s5974_s10 + $0x2d8] sm:$0xff]  }
 0xbcd   : > { %v2742_v54 = vmax.f32 %v2626_v7, 0.0  ;;  %4961 = vmatprep.subr.bf16.mxu1 %v5647_v0  ;;  %4979 = vmatprep.subr.bf16.mxu0 %v5648_v12  ;;  %v5674_v0 = vld [vmem:[%s5974_s10 + $0x288] sm:$0xff]   ;;  %v5675_v12 = vld [vmem:[%s5974_s10 + $0x260] sm:$0xff]   ;;  %v5676_v23 = vld [vmem:[%s5974_s10 + $0x2d0] sm:$0xff]  }
 0xbce   : > { %v2743_v52 = vmax.f32 %v2628_v30, 0.0  ;;  %v5679_v7 = vld [vmem:[%s5974_s10 + $0x268] sm:$0xff]  }
 0xbcf   : > { %v6793_v62 = vpack.c.bf16 %v2742_v54, %v2726_v34  ;;  %v5681_v30 = vld [vmem:[%s5974_s10 + $0x228] sm:$0xff]   ;;  %v5684_v34 = vld [vmem:[%s5974_s10 + $0x2e0] sm:$0xff]   ;;  %v5685_v54 = vld [vmem:[%s5974_s10 + $0x230] sm:$0xff]  }
 0xbd0   : > { %v2759_v1 = vpack.c.bf16 %v2743_v52, %v2727_v50  ;;  %4962 = vmatpush3.bf16.msra.mxu1 %v5649_v3  ;;  %4980 = vmatpush3.bf16.msra.mxu0 %v5650_v33  ;;  %v2707_v15 = vpop.f32.mrb[44].mxu0  ;;  %v5682_v3 = vld [vmem:[%s5974_s10 + $0x298] sm:$0xff]   ;;  %v5683_v33 = vld [vmem:[%s5974_s10 + $0x270] sm:$0xff]   ;;  %v5688_v50 = vld [vmem:[%s5974_s10 + $0x2e8] sm:$0xff]  }
 0xbd1   : > { %v2708_v57 = vadd.f32 %v2707_v15, %v6725_v16  ;;  %v2709_v20 = vpop.f32.mrb[45].mxu0  ;;  %4963 = vmatprep.subr.bf16.mxu1 %v5651_v55  ;;  %4981 = vmatprep.subr.bf16.mxu0 %v5652_v56  ;;  %v5686_v55 = vld [vmem:[%s5974_s10 + $0x2a0] sm:$0xff]   ;;  %v5687_v56 = vld [vmem:[%s5974_s10 + $0x278] sm:$0xff]  }
 0xbd2   : > { %v2710_v25 = vadd.f32 %v2709_v20, %v2192_v21  ;;  %v2711_v45 = vpop.f32.mrb[46].mxu0  ;;  %v5689_v52 = vld [vmem:[%s5974_s10 + $0x238] sm:$0xff]   ;;  %v5692_v15 = vld [vmem:[%s5974_s10 + $0x340] sm:$0xff]   ;;  %v5696_v20 = vld [vmem:[%s5974_s10 + $0x348] sm:$0xff]  }
 0xbd3   : > { %v2712_v59 = vadd.f32 %v2711_v45, %v6725_v16  ;;  %v2713_v44 = vpop.f32.mrb[47].mxu0  ;;  %v2730_v9 = vmax.f32 %v2708_v57, 0.0  ;;  %v5695_v57 = vld [vmem:[%s5974_s10 + $0x2f8] sm:$0xff]   ;;  %v5700_v45 = vld [vmem:[%s5974_s10 + $0x3c0] sm:$0xff]  }
 0xbd4   : > { %v2714_v38 = vadd.f32 %v2713_v44, %v2192_v21  ;;  %4964 = vmatpush3.bf16.msra.mxu1 %v5653_v49  ;;  %4982 = vmatpush3.bf16.msra.mxu0 %v5654_v42  ;;  %v2731_v61 = vmax.f32 %v2710_v25, 0.0  ;;  %v5690_v21 = vld [vmem:[%s5974_s10 + $0x2a8] sm:$0xff]   ;;  %v5693_v49 = vld [vmem:[%s5974_s10 + $0x2b0] sm:$0xff]   ;;  %v5694_v42 = vld [vmem:[%s5974_s10 + $0x300] sm:$0xff]  }
 0xbd5   : > { %v2746_v39 = vmax.f32 %v2712_v59, 0.0  ;;  %4965 = vmatprep.subr.bf16.mxu1 %v5655_v29  ;;  %4983 = vmatprep.subr.bf16.mxu0 %v5656_v5  ;;  %v5697_v29 = vld [vmem:[%s5974_s10 + $0x2b8] sm:$0xff]   ;;  %v5698_v5 = vld [vmem:[%s5974_s10 + $0x308] sm:$0xff]   ;;  %v5699_v25 = vld [vmem:[%s5974_s10 + $0x350] sm:$0xff]  }
 0xbd6   : > { %v2747_v16 = vmax.f32 %v2714_v38, 0.0  ;;  %v5701_v59 = vld [vmem:[%s5974_s10 + $0x310] sm:$0xff]   ;;  %v5703_v44 = vld [vmem:[%s5974_s10 + $0x358] sm:$0xff]   ;;  %v5704_v38 = vld [vmem:[%s5974_s10 + $0x3c8] sm:$0xff]  }
 0xbd7   : > { %v6805_v13 = vpack.c.bf16 %v2746_v39, %v2730_v9  ;;  %v5708_v9 = vld [vmem:[%s5974_s10 + $0x3d0] sm:$0xff]   ;;  %v5709_v39 = vld [vmem:[%s5974_s10 + $0x320] sm:$0xff]  }
 0xbd8   : > { %v6807_v18 = vpack.c.bf16 %v2747_v16, %v2731_v61  ;;  %4966 = vmatpush3.bf16.msra.mxu1 %v5657_v43  ;;  %4984 = vmatpush3.bf16.msra.mxu0 %v5658_v47  ;;  %v5706_v43 = vld [vmem:[%s5974_s10 + $0x388] sm:$0xff]   ;;  %v5707_v47 = vld [vmem:[%s5974_s10 + $0x360] sm:$0xff]   ;;  %v5714_v16 = vld [vmem:[%s5974_s10 + $0x398] sm:$0xff]  }
 0xbd9   : > { %4985 = vmatprep.subr.bf16.mxu0 %v5659_v46  ;;  %4995 = vmatprep.subr.bf16.mxu1 %v5660_v40  ;;  %v5711_v46 = vld [vmem:[%s5974_s10 + $0x368] sm:$0xff]   ;;  %v5712_v40 = vld [vmem:[%s5974_s10 + $0x3d8] sm:$0xff]  }
 0xbda   : > { %v5713_v61 = vld [vmem:[%s5974_s10 + $0x328] sm:$0xff]  }
 0xbdb   : > { %3907 = vmatmul.mubr.bf16.vlgmr.msra.gmra.mrb[48].mxu1 %v6747_v48  ;;  %v5670_v48 = vld [vmem:[%s5974_s10 + $0x280] sm:$0xff]  }
 0xbdc   : > { %4986 = vmatpush3.bf16.msra.mxu0 %v5661_v22  ;;  %4996 = vmatpush3.bf16.msra.mxu1 %v5662_v32  ;;  %v5716_v22 = vld [vmem:[%s5974_s10 + $0x3e0] sm:$0xff]   ;;  %v5717_v32 = vld [vmem:[%s5974_s10 + $0x330] sm:$0xff]  }
 0xbdd   : > { %3988 = vmatprep.mubr.bf16.mxu1 %v6762_v31  ;;  %4987 = vmatprep.subr.bf16.mxu0 %v5663_v28  ;;  %v5673_v31 = vld [vmem:[%s5974_s10 + $0x218] sm:$0xff]   ;;  %v5718_v28 = vld [vmem:[%s5974_s10 + $0x3a0] sm:$0xff]  }
 0xbde   : > { %4997 = vmatprep.subr.bf16.mxu1 %v5664_v6  ;;  %v5719_v6 = vld [vmem:[%s5974_s10 + $0x378] sm:$0xff]  }
 0xbe0   : > { %4988 = vmatpush3.bf16.msra.mxu0 %v5665_v8  ;;  %4998 = vmatpush3.bf16.msra.mxu1 %v5666_v17  ;;  %v5720_v8 = vld [vmem:[%s5974_s10 + $0x3e8] sm:$0xff]   ;;  %v5721_v17 = vld [vmem:[%s5974_s10 + $0x338] sm:$0xff]  }
 0xbe1   : > { %4999 = vmatprep.subr.bf16.mxu1 %v5667_v51  ;;  %5017 = vmatprep.subr.bf16.mxu0 %v5668_v60  ;;  %v5722_v51 = vld [vmem:[%s5974_s10 + $0x3a8] sm:$0xff]   ;;  %v5723_v60 = vld [vmem:[%s5974_s10 + $0x3f0] sm:$0xff]  }
 0xbe3   : > { %3948 = vmatmul.mubr.bf16.vlgmr.msra.gmra.mrb[52].mxu0 %v6776_v11  ;;  %v5678_v11 = vld [vmem:[%s5974_s10 + $0x290] sm:$0xff]  }
 0xbe4   : > { %5000 = vmatpush3.bf16.msra.mxu1 %v5669_v14  ;;  %5018 = vmatpush3.bf16.msra.mxu0 %v5670_v48  ;;  %v5724_v14 = vld [vmem:[%s5974_s10 + $0x3b0] sm:$0xff]   ;;  %v5725_v48 = vld [vmem:[%s5974_s10 + $0x3f8] sm:$0xff]  }
 0xbe5   : > { %4029 = vmatprep.mubr.bf16.mxu0 %v2759_v1  ;;  %5001 = vmatprep.subr.bf16.mxu1 %v5671_v63  ;;  %v5691_v1 = vld [vmem:[%s5974_s10 + $0x2f0] sm:$0xff]   ;;  %v5726_v63 = vld [vmem:[%s5974_s10 + $0x3b8] sm:$0xff]  }
 0xbe6   : > { %5019 = vmatprep.subr.bf16.mxu0 %v5672_v19 }
 0xbe8   : > { %5002 = vmatpush3.bf16.msra.mxu1 %v5673_v31  ;;  %5020 = vmatpush3.bf16.msra.mxu0 %v5674_v0 }
 0xbe9   : > { %5003 = vmatprep.subr.bf16.mxu1 %v5675_v12  ;;  %5021 = vmatprep.subr.bf16.mxu0 %v5676_v23 }
 0xbec   : > { %5004 = vmatpush3.bf16.msra.mxu1 %v5677_v24  ;;  %5022 = vmatpush3.bf16.msra.mxu0 %v5678_v11  ;;  %v6885_v11 = vld [vmem:[%s5958_s19] sm:$0x3f] }
 0xbed   : > { %5005 = vmatprep.subr.bf16.mxu1 %v5679_v7  ;;  %5023 = vmatprep.subr.bf16.mxu0 %v5680_v26  ;;  %v3023_v7 = vrot.slane %v6885_v11, %v6728_v53 }
 0xbf0   : > { %5006 = vmatpush3.bf16.msra.mxu1 %v5681_v30  ;;  %5024 = vmatpush3.bf16.msra.mxu0 %v5682_v3 }
 0xbf1   : > { %5007 = vmatprep.subr.bf16.mxu1 %v5683_v33  ;;  %5025 = vmatprep.subr.bf16.mxu0 %v5684_v34 }
 0xbf4   : > { %5008 = vmatpush3.bf16.msra.mxu1 %v5685_v54  ;;  %5026 = vmatpush3.bf16.msra.mxu0 %v5686_v55 }
 0xbf5   : > { %5009 = vmatprep.subr.bf16.mxu1 %v5687_v56  ;;  %5027 = vmatprep.subr.bf16.mxu0 %v5688_v50 }
 0xbf8   : > { %5010 = vmatpush3.bf16.msra.mxu1 %v5689_v52  ;;  %5028 = vmatpush3.bf16.msra.mxu0 %v5690_v21 }
 0xbf9   : > { %5029 = vmatprep.subr.bf16.mxu0 %v5691_v1  ;;  %5039 = vmatprep.subr.bf16.mxu1 %v5692_v15 }
 0xbfb   : > { %3989 = vmatmul.mubr.bf16.vlgmr.msra.gmra.mrb[52].mxu1 %v6760_v27  ;;  %v5702_v27 = vld [vmem:[%s5974_s10 + $0x380] sm:$0xff]  }
 0xbfc   : > { %5030 = vmatpush3.bf16.msra.mxu0 %v5693_v49  ;;  %5040 = vmatpush3.bf16.msra.mxu1 %v5694_v42 }
 0xbfd   : > { %4070 = vmatprep.mubr.bf16.mxu1 %v6780_v4  ;;  %5031 = vmatprep.subr.bf16.mxu0 %v5695_v57  ;;  %v5705_v4 = vld [vmem:[%s5974_s10 + $0x318] sm:$0xff]  }
 0xbfe   : > { %5041 = vmatprep.subr.bf16.mxu1 %v5696_v20 }
 0xc00   : > { %5032 = vmatpush3.bf16.msra.mxu0 %v5697_v29  ;;  %5042 = vmatpush3.bf16.msra.mxu1 %v5698_v5 }
 0xc01   : > { %5043 = vmatprep.subr.bf16.mxu1 %v5699_v25  ;;  %5061 = vmatprep.subr.bf16.mxu0 %v5700_v45 }
 0xc03   : > { %4030 = vmatmul.mubr.bf16.vlgmr.msra.gmra.mrb[56].mxu0 %v6793_v62  ;;  %v5710_v62 = vld [vmem:[%s5974_s10 + $0x390] sm:$0xff]  }
 0xc04   : > { %5044 = vmatpush3.bf16.msra.mxu1 %v5701_v59  ;;  %5062 = vmatpush3.bf16.msra.mxu0 %v5702_v27 }
 0xc05   : > { %4111 = vmatprep.mubr.bf16.mxu0 %v6807_v18  ;;  %5045 = vmatprep.subr.bf16.mxu1 %v5703_v44  ;;  %v5715_v18 = vld [vmem:[%s5974_s10 + $0x370] sm:$0xff]  }
 0xc06   : > { %5063 = vmatprep.subr.bf16.mxu0 %v5704_v38 }
 0xc08   : > { %5046 = vmatpush3.bf16.msra.mxu1 %v5705_v4  ;;  %5064 = vmatpush3.bf16.msra.mxu0 %v5706_v43 }
 0xc09   : > { %5047 = vmatprep.subr.bf16.mxu1 %v5707_v47  ;;  %5065 = vmatprep.subr.bf16.mxu0 %v5708_v9 }
 0xc0c   : > { %5048 = vmatpush3.bf16.msra.mxu1 %v5709_v39  ;;  %5066 = vmatpush3.bf16.msra.mxu0 %v5710_v62 }
 0xc0d   : > { %5049 = vmatprep.subr.bf16.mxu1 %v5711_v46  ;;  %5067 = vmatprep.subr.bf16.mxu0 %v5712_v40 }
 0xc10   : > { %5050 = vmatpush3.bf16.msra.mxu1 %v5713_v61  ;;  %5068 = vmatpush3.bf16.msra.mxu0 %v5714_v16 }
 0xc11   : > { %5051 = vmatprep.subr.bf16.mxu1 %v5715_v18  ;;  %5069 = vmatprep.subr.bf16.mxu0 %v5716_v22 }
 0xc14   : > { %5052 = vmatpush3.bf16.msra.mxu1 %v5717_v32  ;;  %5070 = vmatpush3.bf16.msra.mxu0 %v5718_v28 }
 0xc15   : > { %5053 = vmatprep.subr.bf16.mxu1 %v5719_v6  ;;  %5071 = vmatprep.subr.bf16.mxu0 %v5720_v8 }
 0xc18   : > { %5054 = vmatpush3.bf16.msra.mxu1 %v5721_v17  ;;  %5072 = vmatpush3.bf16.msra.mxu0 %v5722_v51 }
 0xc19   : > { %5073 = vmatprep.subr.bf16.mxu0 %v5723_v60 }
 0xc1b   : > { %4071 = vmatmul.mubr.bf16.vlgmr.msra.gmra.mrb[56].mxu1 %v6778_v2 }
 0xc1c   : > { %5074 = vmatpush3.bf16.msra.mxu0 %v5724_v14 }
 0xc1d   : > { %5075 = vmatprep.subr.bf16.mxu0 %v5725_v48 }
 0xc20   : > { %5076 = vmatpush3.bf16.msra.mxu0 %v5726_v63 }
 0xc23   : > { %4112 = vmatmul.mubr.bf16.vlgmr.msra.gmra.mrb[60].mxu0 %v6805_v13 }
 0xc8e   : > { %v4923_v19 = vpop.f32.mrb[44].mxu1 }
 0xc8f   : > { %v4924_v31 = vpop.f32.mrb[45].mxu1 }
 0xc90   : > { %v4925_v0 = vadd.f32 %v4924_v31, %v4923_v19  ;;  %v4926_v12 = vpop.f32.mrb[46].mxu1 }
 0xc91   : > { %v4927_v23 = vpop.f32.mrb[47].mxu1 }
 0xc92   : > { %v4928_v24 = vadd.f32 %v4927_v23, %v4926_v12  ;;  %v3827_v2 = vadd.f32 %v4925_v0, %v3023_v7 }
 0xc94   : > { %v3830_v54 = vadd.f32 %v4928_v24, %v3023_v7 }
 0xc96   : > { %v4945_v26 = vpop.f32.mrb[48].mxu0 }
 0xc97   : > { %v4946_v30 = vpop.f32.mrb[49].mxu0 }
 0xc98   : > { %v4947_v3 = vadd.f32 %v4946_v30, %v4945_v26  ;;  %v4948_v33 = vpop.f32.mrb[50].mxu0 }
 0xc99   : > { %v4949_v34 = vpop.f32.mrb[51].mxu0 }
 0xc9a   : > { %v3868_v55 = vadd.f32 %v4947_v3, %v3827_v2  ;;  %v4950_v13 = vadd.f32 %v4949_v34, %v4948_v33 }
 0xc9c   : > { %v3871_v56 = vadd.f32 %v4950_v13, %v3830_v54 }
 0xcae   : > { %v4967_v50 = vpop.f32.mrb[48].mxu1 }
 0xcaf   : > { %v4968_v52 = vpop.f32.mrb[49].mxu1 }
 0xcb0   : > { %v4969_v21 = vadd.f32 %v4968_v52, %v4967_v50  ;;  %v4970_v1 = vpop.f32.mrb[50].mxu1 }
 0xcb1   : > { %v4971_v15 = vpop.f32.mrb[51].mxu1 }
 0xcb2   : > { %v3909_v49 = vadd.f32 %v4969_v21, %v3868_v55  ;;  %v4972_v42 = vadd.f32 %v4971_v15, %v4970_v1 }
 0xcb4   : > { %v3912_v57 = vadd.f32 %v4972_v42, %v3871_v56 }
 0xcb6   : > { %v4989_v20 = vpop.f32.mrb[52].mxu0 }
 0xcb7   : > { %v4990_v53 = vpop.f32.mrb[53].mxu0 }
 0xcb8   : > { %v4991_v29 = vadd.f32 %v4990_v53, %v4989_v20  ;;  %v4992_v5 = vpop.f32.mrb[54].mxu0  ;;  %v4151_v53 = vrot.slane %v6885_v11, %v6736_v36  ;;  %v4241_v36 = vld [vmem:[%s7053_s15 + $0x8] sm:$0xff] (!%p4787_p5) }
 0xcb9   : > { %v4993_v25 = vpop.f32.mrb[55].mxu0 }
 0xcba   : > { %v3950_v45 = vadd.f32 %v4991_v29, %v3909_v49  ;;  %v4994_v59 = vadd.f32 %v4993_v25, %v4992_v5  ;;  %v4157_v5 = vrot.slane %v6885_v11, %v6739_v10  ;;  %v5818_v10 = vmov (!%p4787_p5), 0.0|0.0  }
 0xcbb   : > { %5445 = vmatprep.subr.bf16.mxu1 (!%p4787_p5), %v5818_v10  ;;  %v5820_v11 = vmov (!%p4787_p5), 0.0   ;;  %v4351_v10 = vld [vmem:[%s7055_s17 + $0x78] sm:$0xff] (!%p4787_p5) }
 0xcbc   : > { %v3953_v27 = vadd.f32 %v4994_v59, %v3912_v57  ;;  %5326 = vmatprep.mubr.msk.f32.mxu1 (!%p4787_p5), %vm5819_vm10, %v5820_v11 }
 0xcce   : > { %v5011_v44 = vpop.f32.mrb[52].mxu1 }
 0xccf   : > { %v5012_v38 = vpop.f32.mrb[53].mxu1 }
 0xcd0   : > { %v5013_v4 = vadd.f32 %v5012_v38, %v5011_v44  ;;  %v5014_v43 = vpop.f32.mrb[54].mxu1 }
 0xcd1   : > { %v5015_v47 = vpop.f32.mrb[55].mxu1 }
 0xcd2   : > { %v3991_v9 = vadd.f32 %v5013_v4, %v3950_v45  ;;  %v5016_v39 = vadd.f32 %v5015_v47, %v5014_v43  ;;  %v4243_v47 = vld [vmem:[%s7053_s15 + $0x18] sm:$0xff] (!%p4787_p5) }
 0xcd4   : > { %v3994_v62 = vadd.f32 %v5016_v39, %v3953_v27  ;;  %v4242_v39 = vld [vmem:[%s7053_s15 + $0x10] sm:$0xff] (!%p4787_p5) }
 0xcd6   : > { %v5033_v46 = vpop.f32.mrb[56].mxu0 }
 0xcd7   : > { %v5034_v40 = vpop.f32.mrb[57].mxu0 }
 0xcd8   : > { %v5035_v61 = vadd.f32 %v5034_v40, %v5033_v46  ;;  %v5036_v16 = vpop.f32.mrb[58].mxu0  ;;  %v5448_v46 = vpack.c.bf16 (!%p4787_p5), %v4243_v47, %v4241_v36  ;;  %v4350_v36 = vld [vmem:[%s7055_s17 + $0x70] sm:$0xff] (!%p4787_p5)  ;;  %v4248_v47 = vld [vmem:[%s7081_s25] sm:$0x3] (!%p4787_p5) }
 0xcd9   : > { %v5037_v18 = vpop.f32.mrb[59].mxu0 }
 0xcda   : > { %v4032_v22 = vadd.f32 %v5035_v61, %v3991_v9  ;;  %v5038_v32 = vadd.f32 %v5037_v18, %v5036_v16  ;;  %v4240_v9 = vld [vmem:[%s7053_s15] sm:$0xff] (!%p4787_p5)  ;;  %v4245_v61 = vld [vmem:[%s7053_s15 + $0x28] sm:$0xff] (!%p4787_p5)  ;;  %v4247_v16 = vld [vmem:[%s7053_s15 + $0x38] sm:$0xff] (!%p4787_p5) }
 0xcdb   : > { %v5450_v40 = vpack.c.bf16 (!%p4787_p5), %v4242_v39, %v4240_v9  ;;  %v5452_v18 = vpack.c.bf16 (!%p4787_p5), %v4247_v16, %v4245_v61  ;;  %v4253_v9 = vrot.slane (!%p4787_p5), %v4248_v47, %v6627_v58  ;;  %v4257_v39 = vrot.slane (!%p4787_p5), %v4248_v47, %v6632_v35 }
 0xcdc   : > { %v4035_v28 = vadd.f32 %v5038_v32, %v3994_v62  ;;  %v4166_v62 = vld [vmem:[%s7045_s7] sm:$0x3] (!%p4787_p5)  ;;  %v4246_v32 = vld [vmem:[%s7053_s15 + $0x30] sm:$0xff] (!%p4787_p5) }
 0xcee   : > { %v5055_v6 = vpop.f32.mrb[56].mxu1 }
 0xcef   : > { %v5056_v8 = vpop.f32.mrb[57].mxu1 }
 0xcf0   : > { %v5057_v17 = vadd.f32 %v5056_v8, %v5055_v6  ;;  %v5058_v51 = vpop.f32.mrb[58].mxu1  ;;  %v4352_v6 = vld [vmem:[%s7055_s17 + $0x80] sm:$0xff] (!%p4787_p5)  ;;  %v4353_v8 = vld [vmem:[%s7055_s17 + $0x88] sm:$0xff] (!%p4787_p5) }
 0xcf1   : > { %v5059_v60 = vpop.f32.mrb[59].mxu1 }
 0xcf2   : > { %v4073_v14 = vadd.f32 %v5057_v17, %v4032_v22  ;;  %v5060_v48 = vadd.f32 %v5059_v60, %v5058_v51  ;;  %v4244_v22 = vld [vmem:[%s7053_s15 + $0x20] sm:$0xff] (!%p4787_p5)  ;;  %v5456_v51 = vpack.c.bf16 (!%p4787_p5), %v4353_v8, %v4352_v6  ;;  %v4337_v60 = vld [vmem:[%s7055_s17 + $0x8] sm:$0xff] (!%p4787_p5) }
 0xcf3   : > { %v4336_v17 = vld [vmem:[%s7055_s17] sm:$0xff] (!%p4787_p5) }
 0xcf4   : > { %v4076_v63 = vadd.f32 %v5060_v48, %v4035_v28  ;;  %v5454_v28 = vpack.c.bf16 (!%p4787_p5), %v4246_v32, %v4244_v22  ;;  %v4355_v48 = vld [vmem:[%s7055_s17 + $0x98] sm:$0xff] (!%p4787_p5)  ;;  %5457 = vmatprep.subr.bf16.mxu0 (!%p4787_p5), %v5456_v51  ;;  %v4790_v32 = vld [vmem:[#allocation3] ss:$0 sm:$0xff] (!%p4787_p5) }
 0xcf6   : > { %v5077_v19 = vpop.f32.mrb[60].mxu0 }
 0xcf7   : > { %v5078_v31 = vpop.f32.mrb[61].mxu0 }
 0xcf8   : > { %v5079_v0 = vadd.f32 %v5078_v31, %v5077_v19  ;;  %v5080_v12 = vpop.f32.mrb[62].mxu0  ;;  %v4338_v31 = vld [vmem:[%s7055_s17 + $0x10] sm:$0xff] (!%p4787_p5) }
 0xcf9   : > { %v5081_v23 = vpop.f32.mrb[63].mxu0 }
 0xcfa   : > { %v4114_v24 = vadd.f32 %v5079_v0, %v4073_v14  ;;  %v5082_v7 = vadd.f32 %v5081_v23, %v5080_v12  ;;  %v4354_v14 = vld [vmem:[%s7055_s17 + $0x90] sm:$0xff] (!%p4787_p5)  ;;  %v4339_v0 = vld [vmem:[%s7055_s17 + $0x18] sm:$0xff] (!%p4787_p5)  ;;  %v4356_v12 = vld [vmem:[%s7055_s17 + $0xa0] sm:$0xff] (!%p4787_p5) }
 0xcfb   : > { %v5460_v19 = vpack.c.bf16 (!%p4787_p5), %v4355_v48, %v4354_v14  ;;  %v4357_v23 = vld [vmem:[%s7055_s17 + $0xa8] sm:$0xff] (!%p4787_p5) }
 0xcfc   : > { %v4117_v26 = vadd.f32 %v5082_v7, %v4076_v63  ;;  %v4120_v30 = vadd.f32 %v4114_v24, %v6640_v41  ;;  %v5458_v63 = vpack.c.bf16 (!%p4787_p5), %v4337_v60, %v4336_v17  ;;  %v5462_v24 = vpack.c.bf16 (!%p4787_p5), %v4339_v0, %v4338_v31 }
 0xcfd   : > { %v5464_v7 = vpack.c.bf16 (!%p4787_p5), %v4357_v23, %v4356_v12 }
 0xcfe   : > { %v4122_v2 = vsel %vm852_vm7, %v4120_v30, 0.0  ;;  %v4121_v3 = vadd.f32 %v4117_v26, %v6642_v37  ;;  %5459 = vmatpush3.bf16.msra.mxu0 (!%p4787_p5), %v5458_v63  ;;  %v4340_v26 = vld [vmem:[%s7055_s17 + $0x20] sm:$0xff] (!%p4787_p5) }
 0xcff   : > { %4123 = vadd.xlane.f32.xlu0 %v4122_v2  ;;  %5461 = vmatprep.subr.bf16.mxu0 (!%p4787_p5), %v5460_v19  ;;  %v4358_v2 = vld [vmem:[%s7055_s17 + $0xb0] sm:$0xff] (!%p4787_p5) }
 0xd00   : > { %v4125_v33 = vsel %vm852_vm7, %v4121_v3, 0.0 }
 0xd01   : > { %4126 = vadd.xlane.f32.xlu1 %v4125_v33 }
 0xd02   : > { %5463 = vmatpush3.bf16.msra.mxu0 (!%p4787_p5), %v5462_v24 }
 0xd03   : > { %5465 = vmatprep.subr.bf16.mxu0 (!%p4787_p5), %v5464_v7 }
 0xd8c   : > { %v4124_v34 = vpop.xlane.xlu0 %4123 }
 0xd8d   : > { %v4128_v54 = vmul.f32 0.03125, %v4124_v34 }
 0xd8e   : > { %v4127_v55 = vpop.xlane.xlu1 %4126 }
 0xd8f   : > { %v4130_v13 = vsub.f32 %v4120_v30, %v4128_v54  ;;  %v4129_v56 = vmul.f32 0.03125, %v4127_v55  ;;  %v4341_v30 = vld [vmem:[%s7055_s17 + $0x28] sm:$0xff] (!%p4787_p5)  ;;  %v4342_v54 = vld [vmem:[%s7055_s17 + $0x30] sm:$0xff] (!%p4787_p5)  ;;  %v4343_v55 = vld [vmem:[%s7055_s17 + $0x38] sm:$0xff] (!%p4787_p5) }
 0xd90   : > { %v5466_v33 = vpack.c.bf16 (!%p4787_p5), %v4341_v30, %v4340_v26 }
 0xd91   : > { %v4131_v50 = vsub.f32 %v4121_v3, %v4129_v56  ;;  %v4132_v52 = vmul.f32 %v4130_v13, %v4130_v13  ;;  %v4359_v3 = vld [vmem:[%s7055_s17 + $0xb8] sm:$0xff] (!%p4787_p5)  ;;  %v4361_v56 = vld [vmem:[%s7055_s17 + $0xc8] sm:$0xff] (!%p4787_p5) }
 0xd92   : > { %v5468_v34 = vpack.c.bf16 (!%p4787_p5), %v4359_v3, %v4358_v2  ;;  %5467 = vmatpush3.bf16.msra.mxu0 (!%p4787_p5), %v5466_v33 }
 0xd93   : > { %v4134_v21 = vsel %vm852_vm7, %v4132_v52, 0.0  ;;  %v4133_v1 = vmul.f32 %v4131_v50, %v4131_v50 }
 0xd94   : > { %4135 = vadd.xlane.f32.xlu0 %v4134_v21  ;;  %5469 = vmatprep.subr.bf16.mxu0 (!%p4787_p5), %v5468_v34  ;;  %v4344_v21 = vld [vmem:[%s7055_s17 + $0x40] sm:$0xff] (!%p4787_p5) }
 0xd95   : > { %v4137_v41 = vsel %vm852_vm7, %v4133_v1, 0.0  ;;  %v4345_v1 = vld [vmem:[%s7055_s17 + $0x48] sm:$0xff] (!%p4787_p5) }
 0xd96   : > { %4138 = vadd.xlane.f32.xlu1 %v4137_v41  ;;  %v4362_v41 = vld [vmem:[%s7055_s17 + $0xd0] sm:$0xff] (!%p4787_p5) }
 0xe21   : > { %v4136_v15 = vpop.xlane.xlu0 %4135 }
 0xe22   : > { %v4140_v37 = vmul.f32 0.03125, %v4136_v15  ;;  %v4363_v15 = vld [vmem:[%s7055_s17 + $0xd8] sm:$0xff] (!%p4787_p5) }
 0xe23   : > { %v4139_v49 = vpop.xlane.xlu1 %4138 }
 0xe24   : > { %v4142_v42 = vadd.f32 1e-05, %v4140_v37  ;;  %v4141_v57 = vmul.f32 0.03125, %v4139_v49  ;;  %v5474_v37 = vpack.c.bf16 (!%p4787_p5), %v4345_v1, %v4344_v21  ;;  %v5476_v49 = vpack.c.bf16 (!%p4787_p5), %v4363_v15, %v4362_v41 }
 0xe26   : > { %5795 = vrsqrt.f32 %v4142_v42  ;;  %v4143_v20 = vadd.f32 1e-05, %v4141_v57  ;;  %v4346_v42 = vld [vmem:[%s7055_s17 + $0x50] sm:$0xff] (!%p4787_p5)  ;;  %v4347_v57 = vld [vmem:[%s7055_s17 + $0x58] sm:$0xff] (!%p4787_p5) }
 0xe28   : > { %5797 = vrsqrt.f32 %v4143_v20  ;;  %v4364_v20 = vld [vmem:[%s7055_s17 + $0xe0] sm:$0xff] (!%p4787_p5) }
 0xe30   : > { %v5796_v29 = vpop.eup %5795 }
 0xe31   : > { %v4146_v25 = vmul.f32 %v5796_v29, %v4130_v13  ;;  %v4360_v13 = vld [vmem:[%s7055_s17 + $0xc0] sm:$0xff] (!%p4787_p5)  ;;  %v5478_v29 = vpack.c.bf16 (!%p4787_p5), %v4347_v57, %v4346_v42 }
 0xe32   : > { %v5798_v45 = vpop.eup %5797  ;;  %v5472_v52 = vpack.c.bf16 (!%p4787_p5), %v4361_v56, %v4360_v13 }
 0xe33   : > { %v4152_v59 = vmul.f32 %v4151_v53, %v4146_v25  ;;  %v4147_v27 = vmul.f32 %v5798_v45, %v4131_v50  ;;  %4165 = sbr.rel (%p4787_p5) target bundleno = 4294 (0x10c6), region = 104  ;;  %v5470_v50 = vpack.c.bf16 (!%p4787_p5), %v4343_v55, %v4342_v54 }
 0xe35   : > { %v4158_v44 = vadd.f32 %v4157_v5, %v4152_v59  ;;  %v4153_v38 = vmul.f32 %v4151_v53, %v4147_v27  ;;  %5471 = vmatpush3.bf16.msra.mxu0 (!%p4787_p5), %v5470_v50  ;;  %v4365_v53 = vld [vmem:[%s7055_s17 + $0xe8] sm:$0xff] (!%p4787_p5)  ;;  %v4348_v59 = vld [vmem:[%s7055_s17 + $0x60] sm:$0xff] (!%p4787_p5) }
 0xe36   : > { %5473 = vmatprep.subr.bf16.mxu0 (!%p4787_p5), %v5472_v52  ;;  %v4349_v27 = vld [vmem:[%s7055_s17 + $0x68] sm:$0xff] (!%p4787_p5) }
 0xe37   : > { %4160 = vst.msk [vmem:[#allocation2] sm:$0xff] %vm852_vm7, %v4158_v44  ;;  %v4159_v4 = vadd.f32 %v4157_v5, %v4153_v38  ;;  %v5480_v5 = vpack.c.bf16 (!%p4787_p5), %v4365_v53, %v4364_v20  ;;  %v4366_v38 = vld [vmem:[%s7055_s17 + $0xf0] sm:$0xff] (!%p4787_p5) }
 0xe39   : > { %4161 = vst.msk [vmem:[#allocation2 + $0x8] sm:$0xff] %vm852_vm7, %v4159_v4  ;;  %v5446_v43 = vpack.c.bf16 (!%p4787_p5), %v4159_v4, %v4158_v44  ;;  %5475 = vmatpush3.bf16.msra.mxu0 (!%p4787_p5), %v5474_v37  ;;  %v5482_v44 = vpack.c.bf16 (!%p4787_p5), %v4349_v27, %v4348_v59  ;;  %v4367_v4 = vld [vmem:[%s7055_s17 + $0xf8] sm:$0xff] (!%p4787_p5) }
 0xe3a   : > { %5477 = vmatprep.subr.bf16.mxu0 %v5476_v49 }
 0xe3b   : > { %5447 = vmatpush3.bf16.msra.mxu1 %v5446_v43  ;;  %v5484_v43 = vpack.c.bf16 %v4367_v4, %v4366_v38 }
 0xe3c   : > { %5449 = vmatprep.subr.bf16.mxu1 %v5448_v46 }
 0xe3d   : > { %5479 = vmatpush3.bf16.msra.mxu0 %v5478_v29 }
 0xe3e   : > { %5327 = vmatmul.mubr.msk.f32.vlgmr.msra.gmra.mrb[0].mxu1 %vm913_vm8, %v4166_v62  ;;  %5481 = vmatprep.subr.bf16.mxu0 %v5480_v5 }
 0xe3f   : > { %5451 = vmatpush1.bf16.msra.mxu1 %v5450_v40  ;;  %4327 = vmatprep.mubr.f32.mxu1 %v5820_v11  ;;  %v5486_v11 = vpack.c.bf16 %v4351_v10, %v4350_v36 }
 0xe40   : > { %5453 = vmatprep.subr.bf16.mxu1 %v5452_v18 }
 0xe41   : > { %5483 = vmatpush3.bf16.msra.mxu0 %v5482_v44 }
 0xe42   : > { %5485 = vmatprep.subr.bf16.mxu0 %v5484_v43 }
 0xe43   : > { %5455 = vmatpush1.bf16.msra.mxu1 %v5454_v28 }
 0xe45   : > { %5487 = vmatpush3.bf16.msra.mxu0 %v5486_v11 }
 0xf11   : > { %v4236_v25 = vpop.f32.mrb[0].mxu1 }
 0xf12   : > { %v5328_v45 = vpop.f32.mrb[1].mxu1  ;;  %4789 = vmatmul.mubr.msk.f32.vlgmr.msra.gmra.mrb[2].mxu1 %vm852_vm7, %v4236_v25 }
 0xfe5   : > { %v4329_v62 = vpop.f32.mrb[2].mxu1 }
 0xfe6   : > { %v4330_v46 = vadd.f32 %v4329_v62, %v4253_v9  ;;  %v4331_v40 = vpop.f32.mrb[3].mxu1 }
 0xfe7   : > { %v4332_v61 = vadd.f32 %v4331_v40, %v4257_v39 }
 0xfe8   : > { %v4334_v18 = vmax.f32 %v4330_v46, 0.0 }
 0xfe9   : > { %v4335_v16 = vmax.f32 %v4332_v61, 0.0 }
 0xfeb   : > { %4439 = vmatprep.mubr.f32.mxu0 %v4335_v16 }
 0xfec   : > { %4440 = vmatmul.mubr.f32.vlgmr.msra.gmra.mrb[0].mxu0 %v4334_v18 }
0x10bf   : > { %v5118_v22 = vpop.f32.mrb[0].mxu0 }
0x10c0   : > { %v5119_v28 = vpop.f32.mrb[1].mxu0 }
0x10c1   : > { %v5120_v6 = vadd.f32 %v5119_v28, %v5118_v22 }
0x10c3   : > { %v4442_v8 = vadd.f32 %v5120_v6, %v4790_v32 }
0x10c5   : > { %4446 = vst.msk [vmem:[%s7082_s23] sm:$0x3] %vm4445_vm11, %v4442_v8 }
0x10c6 PF: > { %s7083_s28 = sld [smem:[#allocation4_spill]] }
0x10cc   : > { %s31_s20 = sadd.s32 1, %s7083_s28  }
0x10cd   : > { %p28_p6 = scmp.ge.s32.totalorder %s31_s20, 6  }
0x10cf   :  { %30 = sbr.rel (!%p28_p6) target bundleno = 9 (0x9), region = 148 }

</bundles_post_ra>
